<compile_context>
chip_gen: v6e
topology: v6e:2x2x1
jax: 0.10.0
libtpu: 0.0.40
codegen_flags: <defaults>
</compile_context>

<pallas_src>
import numpy as np
import jax
import jax.numpy as jnp
from jax import lax
from jax.experimental import pallas as pl
from jax.experimental.pallas import tpu as pltpu

B_J0 = 0.01   # baseline threshold of the adaptive LIF neuron
BETA = 1.8    # threshold adaptation strength
R_M = 1.0     # membrane resistance
LANE = 128
N_CONST_ROWS = 16   # packed per-lane constant rows (11 used, padded to 16)


def _round_up(n, m=LANE):
    return ((n + m - 1) // m) * m


def _input_projection(inputs, thr, w1, b1):
    """Ternary input spikes + dense_1 synaptic currents for ALL timesteps.

    Hoisted out of the recurrence: one (T*B, Din) @ (Din, H) matmul instead of
    T tiny M=B matmuls on the serial chain.  thr_func forward is a step fn.
    """
    B, C, T, D = inputs.shape
    x_s = ((inputs - thr > 0.0).astype(jnp.float32)
           - (-thr - inputs > 0.0).astype(jnp.float32))           # (B, C, T, D)
    x_tb = jnp.transpose(x_s, (2, 0, 1, 3)).reshape(T, B, C * D)  # time-major
    i1_all = jnp.einsum("tbd,dh->tbh", x_tb, w1,
                        preferred_element_type=jnp.float32) + b1  # (T, B, H)
    return x_s, i1_all


def _pack_consts(params, H, Hp):
    """Pack all per-lane decay/bias vectors into one (16, Hp) f32 array.

    dense_1 constants occupy lanes [0, H); rnn_1 constants occupy lanes
    [H, 2H) (the lanes where the rnn_1 neuron state lives).  Padding lanes MUST
    stay zero (keeps padded-lane neurons silent).
    Row layout:
      0 a1   1 (1-a1)*R_M   2 ro1   3 (1-ro1)*B_J0   4 BETA*(1-ro1)
      5 ar   6 (1-ar)*R_M   7 ror   8 (1-ror)*B_J0   9 BETA*(1-ror)
      10 b_rnn
    """
    f32 = jnp.float32

    def at(v, lo):
        row = jnp.zeros((Hp,), f32)
        return row.at[lo:lo + H].set(v.reshape(-1).astype(f32))

    a1, r1 = params["alpha1"], params["ro1"]
    ar, rr = params["alphar"], params["ror"]
    rows = [
        at(a1, 0), at((1.0 - a1) * R_M, 0), at(r1, 0),
        at((1.0 - r1) * B_J0, 0), at(BETA * (1.0 - r1), 0),
        at(ar, H), at((1.0 - ar) * R_M, H), at(rr, H),
        at((1.0 - rr) * B_J0, H), at(BETA * (1.0 - rr), H),
        at(params["b_rnn"], H),
    ]
    const = jnp.stack(rows, axis=0)                                 # (11, Hp)
    return jnp.pad(const, ((0, N_CONST_ROWS - const.shape[0]), (0, 0)))


def _make_kernel(Tc, B, Hp, unroll):
    th_init = B_J0 * (1.0 + BETA)     # th = B_J0 + BETA*b with b0 = B_J0

    def kernel(i1_ref, wrr_ref, const_ref, s1seq_ref, s2seq_ref,
               mem1_s, th1_s, spk1_s, mem2_s, th2_s, spk2_s):
        # ---- init persistent neuron state on the first chunk ---------------
        @pl.when(pl.program_id(0) == 0)
        def _():
            z = jnp.zeros((B, Hp), jnp.float32)
            t0 = jnp.full((B, Hp), th_init, jnp.float32)
            mem1_s[...] = z; spk1_s[...] = z; th1_s[...] = t0
            mem2_s[...] = z; spk2_s[...] = z; th2_s[...] = t0

        # Loop-invariant per-lane constants: load + broadcast ONCE (JAX does
        # not CSE broadcast_in_dim inside the loop).  Fine at small B; at large
        # B keep them (1, Hp) instead (see TODO at top of file).
        def row(i):
            return jnp.broadcast_to(const_ref[i:i + 1, :], (B, Hp))

        a1, oma1, r1, c01, c11 = row(0), row(1), row(2), row(3), row(4)
        a2, oma2, r2, c02, c12 = row(5), row(6), row(7), row(8), row(9)
        b_rnn = row(10)
        w_rr = wrr_ref[...]                      # (Hp, Hp) bf16, K <= 128

        init = (mem1_s[...], th1_s[...], spk1_s[...],
                mem2_s[...], th2_s[...], spk2_s[...])

        def step(t, carry):
            mem1, th1, spk1, mem2, th2, spk2 = carry
            i1 = i1_ref[t]                                      # (B, Hp)

            # --- dense_1 : SpikeDENSE (adaptive LIF), current precomputed ---
            th1n = r1 * th1 + c01 + c11 * spk1
            m1n = mem1 * a1 + oma1 * i1 - th1n * spk1
            s1 = (m1n - th1n > 0.0).astype(jnp.float32)

            # --- rnn_1 : SpikeRNN, lane-merged fused [dense|recurrent] matmul
            # s1 lives in lanes [0,H), spk2 in lanes [H,2H): a single add
            # replaces the concat; W_rr routes both into output lanes [H,2H).
            sin = (s1 + spk2).astype(jnp.bfloat16)
            i2 = jnp.dot(sin, w_rr, preferred_element_type=jnp.float32) + b_rnn
            th2n = r2 * th2 + c02 + c12 * spk2
            m2n = mem2 * a2 + oma2 * i2 - th2n * spk2
            s2 = (m2n - th2n > 0.0).astype(jnp.float32)

            s1seq_ref[t] = s1                     # off the serial chain
            s2seq_ref[t] = s2
            return (m1n, th1n, s1, m2n, th2n, s2)

        mem1, th1, spk1, mem2, th2, spk2 = lax.fori_loop(
            0, Tc, step, init, unroll=unroll)

        # ---- persist state for the next chunk ------------------------------
        mem1_s[...] = mem1; th1_s[...] = th1; spk1_s[...] = spk1
        mem2_s[...] = mem2; th2_s[...] = th2; spk2_s[...] = spk2

    return kernel


def srnn_forward(inputs, params, *, t_chunk=64):
    """inputs: (B, C, T, D) float32, exactly like the PyTorch module."""
    B, C, T, D = inputs.shape
    H = params["w1"].shape[1]
    NC = params["w2"].shape[1]
    Hp = _round_up(H)
    if 2 * H > LANE:
        # TODO(synk): concat / tiled-K fallback for network_size > 64.
        raise NotImplementedError("lane-merged SRNN kernel requires 2*H <= 128")

    thr = params["thr"][0]
    x_s, i1_all = _input_projection(inputs, thr, params["w1"], params["b1"])

    # ---- T-chunk streaming (v7x-safe VMEM footprint) -------------------------
    Tc = int(min(T, t_chunk))
    n_chunks = -(-T // Tc)
    Tp = n_chunks * Tc
    i1_p = jnp.pad(i1_all, ((0, Tp - T), (0, 0), (0, Hp - H)))     # zero pad

    # ---- fused recurrent weights: rows [0,H)=Wd, [H,2H)=Wr -> cols [H,2H) ----
    w_rr = jnp.zeros((Hp, Hp), jnp.float32)
    w_rr = w_rr.at[0:H, H:2 * H].set(params["wd"])
    w_rr = w_rr.at[H:2 * H, H:2 * H].set(params["wr"])
    w_rr = w_rr.astype(jnp.bfloat16)          # spikes are 0/1; weights stored
                                              # bf16-representable -> exact MXU
    const = _pack_consts(params, H, Hp)

    # ---- VMEM budget (cap below physical capacity; v7x = 64 MiB/TC) ----------
    try:
        vmem_cap = int(pltpu.get_tpu_info().vmem_capacity_bytes)
    except Exception:
        vmem_cap = 64 * 2**20
    chunk_bytes = Tc * B * Hp * 4
    est = (2 * chunk_bytes                      # i1 chunk, double-buffered
           + 2 * 2 * chunk_bytes                # two spike-seq output chunks
           + 2 * (Hp * Hp * 2 + N_CONST_ROWS * Hp * 4)
           + 6 * B * Hp * 4 + (1 << 20))
    vmem_limit = int(min(int(0.75 * vmem_cap), max(32 * 2**20, 2 * est)))

    s1seq, s2seq = pl.pallas_call(
        _make_kernel(Tc, B, Hp, unroll=min(Tc, 8)),
        out_shape=(jax.ShapeDtypeStruct((Tp, B, Hp), jnp.float32),
                   jax.ShapeDtypeStruct((Tp, B, Hp), jnp.float32)),
        grid=(n_chunks,),
        in_specs=[pl.BlockSpec((Tc, B, Hp), lambda c: (c, 0, 0)),
                  pl.BlockSpec((Hp, Hp), lambda c: (0, 0)),
                  pl.BlockSpec((N_CONST_ROWS, Hp), lambda c: (0, 0))],
        out_specs=(pl.BlockSpec((Tc, B, Hp), lambda c: (c, 0, 0)),
                   pl.BlockSpec((Tc, B, Hp), lambda c: (c, 0, 0))),
        scratch_shapes=[pltpu.VMEM((B, Hp), jnp.float32)] * 6,
        compiler_params=pltpu.CompilerParams(
            dimension_semantics=("arbitrary",),     # chunks are sequential
            vmem_limit_bytes=vmem_limit),
    )(i1_p, w_rr, const)

    # ---- hoisted ReadoutIntegrator + log_softmax (linear in s2) --------------
    s1_real = s1seq[:T, :, :H]                    # dense_1 spikes, lanes [0,H)
    s2_real = s2seq[:T, :, H:2 * H]               # rnn_1 spikes, lanes [H,2H)

    a3 = params["alpha3"].reshape(-1)                                  # (NC,)
    pow_a3 = jnp.cumprod(jnp.broadcast_to(a3[None, :], (T, NC)), axis=0)
    w_t = 1.0 - pow_a3[::-1]                      # w_t[k] = 1 - a3^(T-k)

    i3_all = jnp.einsum("tbh,hc->tbc", s2_real, params["w2"],
                        preferred_element_type=jnp.float32)            # (T,B,NC)
    out = jnp.sum(i3_all * w_t[:, None, :], axis=0)
    out = out + jnp.sum(w_t, axis=0, keepdims=True) * params["b2"]
    logits = jax.nn.log_softmax(out * (1.0 / T), axis=1)

    stats = jnp.stack([jnp.mean(jnp.abs(x_s)),
                       jnp.mean(s1_real),
                       jnp.mean(s2_real)])
    return logits, stats


def init_params(key, din, h, nc):
    """Deterministic synthetic init mirroring the module's __init__ shapes."""
    ks = jax.random.split(key, 9)

    def bf16_round(w):
        # Weights stored at bf16-representable values so the kernel's bf16 MXU
        # matmuls and the f32 reference see identical products.
        return w.astype(jnp.bfloat16).astype(jnp.float32)

    def xavier_normal(k, shape):          # shape = (fan_in, fan_out)
        std = float(np.sqrt(2.0 / (shape[0] + shape[1])))
        return bf16_round((std * jax.random.normal(k, shape)).astype(jnp.float32))

    def kaiming_normal(k, shape):         # fan_in mode
        std = float(np.sqrt(2.0 / shape[0]))
        return bf16_round((std * jax.random.normal(k, shape)).astype(jnp.float32))

    def tau(k, shape, mean, std):
        return jnp.maximum(mean + std * jax.random.normal(k, shape),
                           1.0).astype(jnp.float32)

    p = dict(
        thr=jnp.full((1,), 0.05, jnp.float32),            # nn.Parameter thr
        w1=xavier_normal(ks[0], (din, h)),                # dense_1.dense
        b1=jnp.zeros((1, h), jnp.float32),
        wd=kaiming_normal(ks[1], (h, h)),                 # rnn_1.dense
        wr=kaiming_normal(ks[2], (h, h)),                 # rnn_1.recurrent
        b_rnn=jnp.zeros((1, h), jnp.float32),
        w2=xavier_normal(ks[3], (h, nc)),                 # dense_2.dense
        b2=jnp.zeros((1, nc), jnp.float32),
    )
    tau_m1 = tau(ks[4], (1, h), 20.0, 5.0)
    tau_adp1 = tau(ks[5], (1, h), 200.0, 50.0)
    tau_mr = tau(ks[6], (1, h), 20.0, 5.0)
    tau_adpr = tau(ks[7], (1, h), 200.0, 50.0)
    tau_m3 = tau(ks[8], (1, nc), 10.0, 1.0)
    p["alpha1"] = jnp.exp(-1.0 / tau_m1)
    p["ro1"] = jnp.exp(-1.0 / tau_adp1)
    p["alphar"] = jnp.exp(-1.0 / tau_mr)
    p["ror"] = jnp.exp(-1.0 / tau_adpr)
    p["alpha3"] = jnp.exp(-1.0 / tau_m3)
    return p


def srnn_reference(inputs, p):
    """Pure-JAX reference of the PyTorch forward (adaptive-LIF SRNN).

    Faithful per-step recursion: adaptive-b carry, concat dense+recurrent
    matmul, per-step leaky readout integration.
    """
    B, C, T, D = inputs.shape
    H = p["w1"].shape[1]
    NC = p["w2"].shape[1]
    thr = p["thr"][0]

    x_s, i1_all = _input_projection(inputs, thr, p["w1"], p["b1"])
    w_cat = jnp.concatenate([p["wd"], p["wr"]], axis=0)     # (2H, H)

    mem1 = jnp.zeros((B, H)); spk1 = jnp.zeros((B, H)); b1 = jnp.full((B, H), B_J0)
    memr = jnp.zeros((B, H)); spkr = jnp.zeros((B, H)); br = jnp.full((B, H), B_J0)
    mem3 = jnp.zeros((B, NC)); out = jnp.zeros((B, NC))
    fr1, fr2 = [], []
    for t in range(T):
        i1 = i1_all[t]

        b1 = p["ro1"] * b1 + (1 - p["ro1"]) * spk1
        th1 = B_J0 + BETA * b1
        mem1 = mem1 * p["alpha1"] + (1 - p["alpha1"]) * R_M * i1 - th1 * spk1
        spk1 = (mem1 - th1 > 0.0).astype(jnp.float32)

        ir = jnp.dot(jnp.concatenate([spk1, spkr], axis=1), w_cat,
                     preferred_element_type=jnp.float32) + p["b_rnn"]
        br = p["ror"] * br + (1 - p["ror"]) * spkr
        th2 = B_J0 + BETA * br
        memr = memr * p["alphar"] + (1 - p["alphar"]) * R_M * ir - th2 * spkr
        spkr = (memr - th2 > 0.0).astype(jnp.float32)

        i3 = jnp.dot(spkr, p["w2"], preferred_element_type=jnp.float32) + p["b2"]
        mem3 = mem3 * p["alpha3"] + (1 - p["alpha3"]) * i3
        out = out + mem3
        fr1.append(jnp.mean(spk1))
        fr2.append(jnp.mean(spkr))

    logits = jax.nn.log_softmax(out * (1.0 / T), axis=1)
    stats = jnp.stack([jnp.mean(jnp.abs(x_s)),
                       jnp.mean(jnp.stack(fr1)),
                       jnp.mean(jnp.stack(fr2))])
    return logits, stats


if __name__ == "__main__":
    # Shapes implied by the module: C*D = 120 input features, 12 classes;
    # hidden=32, batch=2, seq=8 for the smoke test.
    B, C, T, D = 2, 3, 8, 40
    H, NC = 32, 12

    key = jax.random.PRNGKey(0)
    k_in, k_par = jax.random.split(key)
    inputs = (0.1 * jax.random.normal(k_in, (B, C, T, D))).astype(jnp.float32)
    params = init_params(k_par, C * D, H, NC)

    fwd = jax.jit(srnn_forward)
    logits, stats = jax.block_until_ready(fwd(inputs, params))

    ref_logits, ref_stats = srnn_reference(inputs, params)
    np.testing.assert_allclose(np.asarray(logits), np.asarray(ref_logits),
                               atol=1e-4, rtol=1e-4)
    np.testing.assert_allclose(np.asarray(stats), np.asarray(ref_stats),
                               atol=1e-5, rtol=1e-5)
    assert np.all(np.isfinite(np.asarray(logits)))
    print("KERNEL_OK")
</pallas_src>

<mosaic_0001>
module attributes {stable_mosaic.version = 11 : i64} {
  func.func @kernel(%arg0: i32, %arg1: memref<8x2x128xf32, #tpu.memory_space<vmem>>, %arg2: memref<128x128xbf16, #tpu.memory_space<vmem>>, %arg3: memref<16x128xf32, #tpu.memory_space<vmem>>, %arg4: memref<8x2x128xf32, #tpu.memory_space<vmem>>, %arg5: memref<8x2x128xf32, #tpu.memory_space<vmem>>, %arg6: memref<2x128xf32, #tpu.memory_space<vmem>>, %arg7: memref<2x128xf32, #tpu.memory_space<vmem>>, %arg8: memref<2x128xf32, #tpu.memory_space<vmem>>, %arg9: memref<2x128xf32, #tpu.memory_space<vmem>>, %arg10: memref<2x128xf32, #tpu.memory_space<vmem>>, %arg11: memref<2x128xf32, #tpu.memory_space<vmem>>) attributes {dimension_semantics = [#tpu.dimension_semantics<arbitrary>], iteration_bounds = array<i64: 1>, scalar_prefetch = 0 : i64, scratch_operands = 6 : i64, tpu.core_type = #tpu.core_type<tc>, window_params = [{transform_indices = @transform_0, window_bounds = array<i64: 8, 2, 128>}, {pipeline_mode = #tpu.pipeline_mode<synchronous>, transform_indices = @transform_1, window_bounds = array<i64: 128, 128>}, {pipeline_mode = #tpu.pipeline_mode<synchronous>, transform_indices = @transform_2, window_bounds = array<i64: 16, 128>}, {transform_indices = @transform_3, window_bounds = array<i64: 8, 2, 128>}, {transform_indices = @transform_4, window_bounds = array<i64: 8, 2, 128>}]} {
    %c0_i32 = arith.constant 0 : i32
    %0 = arith.cmpi eq, %arg0, %c0_i32 : i32
    %1 = arith.extui %0 : i1 to i32
    %c0_i32_0 = arith.constant 0 : i32
    %2 = arith.cmpi ne, %1, %c0_i32_0 : i32
    scf.if %2 {
      %cst_110 = arith.constant 0.000000e+00 : f32
      %393 = vector.broadcast %cst_110 : f32 to vector<2x128xf32>
      %cst_111 = arith.constant 2.800000e-02 : f32
      %394 = vector.broadcast %cst_111 : f32 to vector<2x128xf32>
      %c0_112 = arith.constant 0 : index
      %c0_113 = arith.constant 0 : index
      %395 = vector.load %arg6[%c0_112, %c0_113] : memref<2x128xf32, #tpu.memory_space<vmem>>, vector<2x128xf32>
      tpu.vector_store %arg6[%c0_112, %c0_113], %393 {strides = array<i32>} : memref<2x128xf32, #tpu.memory_space<vmem>>, vector<2x128xf32>,
      %c0_114 = arith.constant 0 : index
      %c0_115 = arith.constant 0 : index
      %396 = vector.load %arg8[%c0_114, %c0_115] : memref<2x128xf32, #tpu.memory_space<vmem>>, vector<2x128xf32>
      tpu.vector_store %arg8[%c0_114, %c0_115], %393 {strides = array<i32>} : memref<2x128xf32, #tpu.memory_space<vmem>>, vector<2x128xf32>,
      %c0_116 = arith.constant 0 : index
      %c0_117 = arith.constant 0 : index
      %397 = vector.load %arg7[%c0_116, %c0_117] : memref<2x128xf32, #tpu.memory_space<vmem>>, vector<2x128xf32>
      tpu.vector_store %arg7[%c0_116, %c0_117], %394 {strides = array<i32>} : memref<2x128xf32, #tpu.memory_space<vmem>>, vector<2x128xf32>,
      %c0_118 = arith.constant 0 : index
      %c0_119 = arith.constant 0 : index
      %398 = vector.load %arg9[%c0_118, %c0_119] : memref<2x128xf32, #tpu.memory_space<vmem>>, vector<2x128xf32>
      tpu.vector_store %arg9[%c0_118, %c0_119], %393 {strides = array<i32>} : memref<2x128xf32, #tpu.memory_space<vmem>>, vector<2x128xf32>,
      %c0_120 = arith.constant 0 : index
      %c0_121 = arith.constant 0 : index
      %399 = vector.load %arg11[%c0_120, %c0_121] : memref<2x128xf32, #tpu.memory_space<vmem>>, vector<2x128xf32>
      tpu.vector_store %arg11[%c0_120, %c0_121], %393 {strides = array<i32>} : memref<2x128xf32, #tpu.memory_space<vmem>>, vector<2x128xf32>,
      %c0_122 = arith.constant 0 : index
      %c0_123 = arith.constant 0 : index
      %400 = vector.load %arg10[%c0_122, %c0_123] : memref<2x128xf32, #tpu.memory_space<vmem>>, vector<2x128xf32>
      tpu.vector_store %arg10[%c0_122, %c0_123], %394 {strides = array<i32>} : memref<2x128xf32, #tpu.memory_space<vmem>>, vector<2x128xf32>,
    } else {
    }
    %c0 = arith.constant 0 : index
    %c0_1 = arith.constant 0 : index
    %3 = vector.load %arg3[%c0, %c0_1] : memref<16x128xf32, #tpu.memory_space<vmem>>, vector<1x128xf32>
    %4 = vector.shape_cast %3 : vector<1x128xf32> to vector<1x128xf32>
    %5 = vector.broadcast %4 : vector<1x128xf32> to vector<2x128xf32>
    %c1 = arith.constant 1 : index
    %c0_2 = arith.constant 0 : index
    %6 = vector.load %arg3[%c1, %c0_2] : memref<16x128xf32, #tpu.memory_space<vmem>>, vector<1x128xf32>
    %7 = vector.shape_cast %6 : vector<1x128xf32> to vector<1x128xf32>
    %8 = vector.broadcast %7 : vector<1x128xf32> to vector<2x128xf32>
    %c2 = arith.constant 2 : index
    %c0_3 = arith.constant 0 : index
    %9 = vector.load %arg3[%c2, %c0_3] : memref<16x128xf32, #tpu.memory_space<vmem>>, vector<1x128xf32>
    %10 = vector.shape_cast %9 : vector<1x128xf32> to vector<1x128xf32>
    %11 = vector.broadcast %10 : vector<1x128xf32> to vector<2x128xf32>
    %c3 = arith.constant 3 : index
    %c0_4 = arith.constant 0 : index
    %12 = vector.load %arg3[%c3, %c0_4] : memref<16x128xf32, #tpu.memory_space<vmem>>, vector<1x128xf32>
    %13 = vector.shape_cast %12 : vector<1x128xf32> to vector<1x128xf32>
    %14 = vector.broadcast %13 : vector<1x128xf32> to vector<2x128xf32>
    %c4 = arith.constant 4 : index
    %c0_5 = arith.constant 0 : index
    %15 = vector.load %arg3[%c4, %c0_5] : memref<16x128xf32, #tpu.memory_space<vmem>>, vector<1x128xf32>
    %16 = vector.shape_cast %15 : vector<1x128xf32> to vector<1x128xf32>
    %17 = vector.broadcast %16 : vector<1x128xf32> to vector<2x128xf32>
    %c5 = arith.constant 5 : index
    %c0_6 = arith.constant 0 : index
    %18 = vector.load %arg3[%c5, %c0_6] : memref<16x128xf32, #tpu.memory_space<vmem>>, vector<1x128xf32>
    %19 = vector.shape_cast %18 : vector<1x128xf32> to vector<1x128xf32>
    %20 = vector.broadcast %19 : vector<1x128xf32> to vector<2x128xf32>
    %c6 = arith.constant 6 : index
    %c0_7 = arith.constant 0 : index
    %21 = vector.load %arg3[%c6, %c0_7] : memref<16x128xf32, #tpu.memory_space<vmem>>, vector<1x128xf32>
    %22 = vector.shape_cast %21 : vector<1x128xf32> to vector<1x128xf32>
    %23 = vector.broadcast %22 : vector<1x128xf32> to vector<2x128xf32>
    %c7 = arith.constant 7 : index
    %c0_8 = arith.constant 0 : index
    %24 = vector.load %arg3[%c7, %c0_8] : memref<16x128xf32, #tpu.memory_space<vmem>>, vector<1x128xf32>
    %25 = vector.shape_cast %24 : vector<1x128xf32> to vector<1x128xf32>
    %26 = vector.broadcast %25 : vector<1x128xf32> to vector<2x128xf32>
    %c8 = arith.constant 8 : index
    %c0_9 = arith.constant 0 : index
    %27 = vector.load %arg3[%c8, %c0_9] : memref<16x128xf32, #tpu.memory_space<vmem>>, vector<1x128xf32>
    %28 = vector.shape_cast %27 : vector<1x128xf32> to vector<1x128xf32>
    %29 = vector.broadcast %28 : vector<1x128xf32> to vector<2x128xf32>
    %c9 = arith.constant 9 : index
    %c0_10 = arith.constant 0 : index
    %30 = vector.load %arg3[%c9, %c0_10] : memref<16x128xf32, #tpu.memory_space<vmem>>, vector<1x128xf32>
    %31 = vector.shape_cast %30 : vector<1x128xf32> to vector<1x128xf32>
    %32 = vector.broadcast %31 : vector<1x128xf32> to vector<2x128xf32>
    %c10 = arith.constant 10 : index
    %c0_11 = arith.constant 0 : index
    %33 = vector.load %arg3[%c10, %c0_11] : memref<16x128xf32, #tpu.memory_space<vmem>>, vector<1x128xf32>
    %34 = vector.shape_cast %33 : vector<1x128xf32> to vector<1x128xf32>
    %35 = vector.broadcast %34 : vector<1x128xf32> to vector<2x128xf32>
    %c0_12 = arith.constant 0 : index
    %c0_13 = arith.constant 0 : index
    %36 = vector.load %arg2[%c0_12, %c0_13] : memref<128x128xbf16, #tpu.memory_space<vmem>>, vector<128x128xbf16>
    %c0_14 = arith.constant 0 : index
    %c0_15 = arith.constant 0 : index
    %37 = vector.load %arg6[%c0_14, %c0_15] : memref<2x128xf32, #tpu.memory_space<vmem>>, vector<2x128xf32>
    %c0_16 = arith.constant 0 : index
    %c0_17 = arith.constant 0 : index
    %38 = vector.load %arg7[%c0_16, %c0_17] : memref<2x128xf32, #tpu.memory_space<vmem>>, vector<2x128xf32>
    %c0_18 = arith.constant 0 : index
    %c0_19 = arith.constant 0 : index
    %39 = vector.load %arg8[%c0_18, %c0_19] : memref<2x128xf32, #tpu.memory_space<vmem>>, vector<2x128xf32>
    %c0_20 = arith.constant 0 : index
    %c0_21 = arith.constant 0 : index
    %40 = vector.load %arg9[%c0_20, %c0_21] : memref<2x128xf32, #tpu.memory_space<vmem>>, vector<2x128xf32>
    %c0_22 = arith.constant 0 : index
    %c0_23 = arith.constant 0 : index
    %41 = vector.load %arg10[%c0_22, %c0_23] : memref<2x128xf32, #tpu.memory_space<vmem>>, vector<2x128xf32>
    %c0_24 = arith.constant 0 : index
    %c0_25 = arith.constant 0 : index
    %42 = vector.load %arg11[%c0_24, %c0_25] : memref<2x128xf32, #tpu.memory_space<vmem>>, vector<2x128xf32>
    %c0_i32_26 = arith.constant 0 : i32
    %43 = arith.index_cast %c0_i32_26 : i32 to index
    %c0_27 = arith.constant 0 : index
    %c0_28 = arith.constant 0 : index
    %44 = vector.load %arg1[%43, %c0_27, %c0_28] : memref<8x2x128xf32, #tpu.memory_space<vmem>>, vector<1x2x128xf32>
    %45 = vector.shape_cast %44 : vector<1x2x128xf32> to vector<2x128xf32>
    %46 = arith.mulf %11, %38 : vector<2x128xf32>
    %47 = arith.addf %46, %14 : vector<2x128xf32>
    %48 = arith.mulf %17, %39 : vector<2x128xf32>
    %49 = arith.addf %47, %48 : vector<2x128xf32>
    %50 = arith.mulf %37, %5 : vector<2x128xf32>
    %51 = arith.mulf %8, %45 : vector<2x128xf32>
    %52 = arith.addf %50, %51 : vector<2x128xf32>
    %53 = arith.mulf %49, %39 : vector<2x128xf32>
    %54 = arith.subf %52, %53 : vector<2x128xf32>
    %55 = arith.subf %54, %49 : vector<2x128xf32>
    %cst = arith.constant 0.000000e+00 : f32
    %56 = vector.broadcast %cst : f32 to vector<2x128xf32>
    %57 = arith.cmpf ogt, %55, %56 : vector<2x128xf32>
    %58 = arith.extui %57 : vector<2x128xi1> to vector<2x128xi32>
    %59 = arith.sitofp %58 : vector<2x128xi32> to vector<2x128xf32>
    %60 = arith.addf %59, %42 : vector<2x128xf32>
    %61 = arith.truncf %60 : vector<2x128xf32> to vector<2x128xbf16>
    %cst_29 = arith.constant dense<0.000000e+00> : vector<2x128xf32>
    %62 = tpu.matmul %61, %36, %cst_29 {dimension_numbers = #tpu.dot_dimension_numbers<[1], [0], [0], [1], [0, 0, 1, 1], [], []>} : vector<2x128xbf16>, vector<128x128xbf16>, vector<2x128xf32> -> vector<2x128xf32>
    %63 = arith.addf %62, %35 : vector<2x128xf32>
    %64 = arith.mulf %26, %41 : vector<2x128xf32>
    %65 = arith.addf %64, %29 : vector<2x128xf32>
    %66 = arith.mulf %32, %42 : vector<2x128xf32>
    %67 = arith.addf %65, %66 : vector<2x128xf32>
    %68 = arith.mulf %40, %20 : vector<2x128xf32>
    %69 = arith.mulf %23, %63 : vector<2x128xf32>
    %70 = arith.addf %68, %69 : vector<2x128xf32>
    %71 = arith.mulf %67, %42 : vector<2x128xf32>
    %72 = arith.subf %70, %71 : vector<2x128xf32>
    %73 = arith.subf %72, %67 : vector<2x128xf32>
    %cst_30 = arith.constant 0.000000e+00 : f32
    %74 = vector.broadcast %cst_30 : f32 to vector<2x128xf32>
    %75 = arith.cmpf ogt, %73, %74 : vector<2x128xf32>
    %76 = arith.extui %75 : vector<2x128xi1> to vector<2x128xi32>
    %77 = arith.sitofp %76 : vector<2x128xi32> to vector<2x128xf32>
    %78 = arith.index_cast %c0_i32_26 : i32 to index
    %c0_31 = arith.constant 0 : index
    %c0_32 = arith.constant 0 : index
    %79 = vector.load %arg4[%78, %c0_31, %c0_32] : memref<8x2x128xf32, #tpu.memory_space<vmem>>, vector<1x2x128xf32>
    %80 = vector.shape_cast %79 : vector<1x2x128xf32> to vector<2x128xf32>
    %81 = vector.shape_cast %59 : vector<2x128xf32> to vector<1x2x128xf32>
    tpu.vector_store %arg4[%78, %c0_31, %c0_32], %81 {strides = array<i32>} : memref<8x2x128xf32, #tpu.memory_space<vmem>>, vector<1x2x128xf32>,
    %82 = arith.index_cast %c0_i32_26 : i32 to index
    %c0_33 = arith.constant 0 : index
    %c0_34 = arith.constant 0 : index
    %83 = vector.load %arg5[%82, %c0_33, %c0_34] : memref<8x2x128xf32, #tpu.memory_space<vmem>>, vector<1x2x128xf32>
    %84 = vector.shape_cast %83 : vector<1x2x128xf32> to vector<2x128xf32>
    %85 = vector.shape_cast %77 : vector<2x128xf32> to vector<1x2x128xf32>
    tpu.vector_store %arg5[%82, %c0_33, %c0_34], %85 {strides = array<i32>} : memref<8x2x128xf32, #tpu.memory_space<vmem>>, vector<1x2x128xf32>,
    %c1_i32 = arith.constant 1 : i32
    %86 = arith.index_cast %c1_i32 : i32 to index
    %c0_35 = arith.constant 0 : index
    %c0_36 = arith.constant 0 : index
    %87 = vector.load %arg1[%86, %c0_35, %c0_36] : memref<8x2x128xf32, #tpu.memory_space<vmem>>, vector<1x2x128xf32>
    %88 = vector.shape_cast %87 : vector<1x2x128xf32> to vector<2x128xf32>
    %89 = arith.mulf %11, %49 : vector<2x128xf32>
    %90 = arith.addf %89, %14 : vector<2x128xf32>
    %91 = arith.mulf %17, %59 : vector<2x128xf32>
    %92 = arith.addf %90, %91 : vector<2x128xf32>
    %93 = arith.mulf %54, %5 : vector<2x128xf32>
    %94 = arith.mulf %8, %88 : vector<2x128xf32>
    %95 = arith.addf %93, %94 : vector<2x128xf32>
    %96 = arith.mulf %92, %59 : vector<2x128xf32>
    %97 = arith.subf %95, %96 : vector<2x128xf32>
    %98 = arith.subf %97, %92 : vector<2x128xf32>
    %cst_37 = arith.constant 0.000000e+00 : f32
    %99 = vector.broadcast %cst_37 : f32 to vector<2x128xf32>
    %100 = arith.cmpf ogt, %98, %99 : vector<2x128xf32>
    %101 = arith.extui %100 : vector<2x128xi1> to vector<2x128xi32>
    %102 = arith.sitofp %101 : vector<2x128xi32> to vector<2x128xf32>
    %103 = arith.addf %102, %77 : vector<2x128xf32>
    %104 = arith.truncf %103 : vector<2x128xf32> to vector<2x128xbf16>
    %cst_38 = arith.constant dense<0.000000e+00> : vector<2x128xf32>
    %105 = tpu.matmul %104, %36, %cst_38 {dimension_numbers = #tpu.dot_dimension_numbers<[1], [0], [0], [1], [0, 0, 1, 1], [], []>} : vector<2x128xbf16>, vector<128x128xbf16>, vector<2x128xf32> -> vector<2x128xf32>
    %106 = arith.addf %105, %35 : vector<2x128xf32>
    %107 = arith.mulf %26, %67 : vector<2x128xf32>
    %108 = arith.addf %107, %29 : vector<2x128xf32>
    %109 = arith.mulf %32, %77 : vector<2x128xf32>
    %110 = arith.addf %108, %109 : vector<2x128xf32>
    %111 = arith.mulf %72, %20 : vector<2x128xf32>
    %112 = arith.mulf %23, %106 : vector<2x128xf32>
    %113 = arith.addf %111, %112 : vector<2x128xf32>
    %114 = arith.mulf %110, %77 : vector<2x128xf32>
    %115 = arith.subf %113, %114 : vector<2x128xf32>
    %116 = arith.subf %115, %110 : vector<2x128xf32>
    %cst_39 = arith.constant 0.000000e+00 : f32
    %117 = vector.broadcast %cst_39 : f32 to vector<2x128xf32>
    %118 = arith.cmpf ogt, %116, %117 : vector<2x128xf32>
    %119 = arith.extui %118 : vector<2x128xi1> to vector<2x128xi32>
    %120 = arith.sitofp %119 : vector<2x128xi32> to vector<2x128xf32>
    %121 = arith.index_cast %c1_i32 : i32 to index
    %c0_40 = arith.constant 0 : index
    %c0_41 = arith.constant 0 : index
    %122 = vector.load %arg4[%121, %c0_40, %c0_41] : memref<8x2x128xf32, #tpu.memory_space<vmem>>, vector<1x2x128xf32>
    %123 = vector.shape_cast %122 : vector<1x2x128xf32> to vector<2x128xf32>
    %124 = vector.shape_cast %102 : vector<2x128xf32> to vector<1x2x128xf32>
    tpu.vector_store %arg4[%121, %c0_40, %c0_41], %124 {strides = array<i32>} : memref<8x2x128xf32, #tpu.memory_space<vmem>>, vector<1x2x128xf32>,
    %125 = arith.index_cast %c1_i32 : i32 to index
    %c0_42 = arith.constant 0 : index
    %c0_43 = arith.constant 0 : index
    %126 = vector.load %arg5[%125, %c0_42, %c0_43] : memref<8x2x128xf32, #tpu.memory_space<vmem>>, vector<1x2x128xf32>
    %127 = vector.shape_cast %126 : vector<1x2x128xf32> to vector<2x128xf32>
    %128 = vector.shape_cast %120 : vector<2x128xf32> to vector<1x2x128xf32>
    tpu.vector_store %arg5[%125, %c0_42, %c0_43], %128 {strides = array<i32>} : memref<8x2x128xf32, #tpu.memory_space<vmem>>, vector<1x2x128xf32>,
    %c2_i32 = arith.constant 2 : i32
    %129 = arith.index_cast %c2_i32 : i32 to index
    %c0_44 = arith.constant 0 : index
    %c0_45 = arith.constant 0 : index
    %130 = vector.load %arg1[%129, %c0_44, %c0_45] : memref<8x2x128xf32, #tpu.memory_space<vmem>>, vector<1x2x128xf32>
    %131 = vector.shape_cast %130 : vector<1x2x128xf32> to vector<2x128xf32>
    %132 = arith.mulf %11, %92 : vector<2x128xf32>
    %133 = arith.addf %132, %14 : vector<2x128xf32>
    %134 = arith.mulf %17, %102 : vector<2x128xf32>
    %135 = arith.addf %133, %134 : vector<2x128xf32>
    %136 = arith.mulf %97, %5 : vector<2x128xf32>
    %137 = arith.mulf %8, %131 : vector<2x128xf32>
    %138 = arith.addf %136, %137 : vector<2x128xf32>
    %139 = arith.mulf %135, %102 : vector<2x128xf32>
    %140 = arith.subf %138, %139 : vector<2x128xf32>
    %141 = arith.subf %140, %135 : vector<2x128xf32>
    %cst_46 = arith.constant 0.000000e+00 : f32
    %142 = vector.broadcast %cst_46 : f32 to vector<2x128xf32>
    %143 = arith.cmpf ogt, %141, %142 : vector<2x128xf32>
    %144 = arith.extui %143 : vector<2x128xi1> to vector<2x128xi32>
    %145 = arith.sitofp %144 : vector<2x128xi32> to vector<2x128xf32>
    %146 = arith.addf %145, %120 : vector<2x128xf32>
    %147 = arith.truncf %146 : vector<2x128xf32> to vector<2x128xbf16>
    %cst_47 = arith.constant dense<0.000000e+00> : vector<2x128xf32>
    %148 = tpu.matmul %147, %36, %cst_47 {dimension_numbers = #tpu.dot_dimension_numbers<[1], [0], [0], [1], [0, 0, 1, 1], [], []>} : vector<2x128xbf16>, vector<128x128xbf16>, vector<2x128xf32> -> vector<2x128xf32>
    %149 = arith.addf %148, %35 : vector<2x128xf32>
    %150 = arith.mulf %26, %110 : vector<2x128xf32>
    %151 = arith.addf %150, %29 : vector<2x128xf32>
    %152 = arith.mulf %32, %120 : vector<2x128xf32>
    %153 = arith.addf %151, %152 : vector<2x128xf32>
    %154 = arith.mulf %115, %20 : vector<2x128xf32>
    %155 = arith.mulf %23, %149 : vector<2x128xf32>
    %156 = arith.addf %154, %155 : vector<2x128xf32>
    %157 = arith.mulf %153, %120 : vector<2x128xf32>
    %158 = arith.subf %156, %157 : vector<2x128xf32>
    %159 = arith.subf %158, %153 : vector<2x128xf32>
    %cst_48 = arith.constant 0.000000e+00 : f32
    %160 = vector.broadcast %cst_48 : f32 to vector<2x128xf32>
    %161 = arith.cmpf ogt, %159, %160 : vector<2x128xf32>
    %162 = arith.extui %161 : vector<2x128xi1> to vector<2x128xi32>
    %163 = arith.sitofp %162 : vector<2x128xi32> to vector<2x128xf32>
    %164 = arith.index_cast %c2_i32 : i32 to index
    %c0_49 = arith.constant 0 : index
    %c0_50 = arith.constant 0 : index
    %165 = vector.load %arg4[%164, %c0_49, %c0_50] : memref<8x2x128xf32, #tpu.memory_space<vmem>>, vector<1x2x128xf32>
    %166 = vector.shape_cast %165 : vector<1x2x128xf32> to vector<2x128xf32>
    %167 = vector.shape_cast %145 : vector<2x128xf32> to vector<1x2x128xf32>
    tpu.vector_store %arg4[%164, %c0_49, %c0_50], %167 {strides = array<i32>} : memref<8x2x128xf32, #tpu.memory_space<vmem>>, vector<1x2x128xf32>,
    %168 = arith.index_cast %c2_i32 : i32 to index
    %c0_51 = arith.constant 0 : index
    %c0_52 = arith.constant 0 : index
    %169 = vector.load %arg5[%168, %c0_51, %c0_52] : memref<8x2x128xf32, #tpu.memory_space<vmem>>, vector<1x2x128xf32>
    %170 = vector.shape_cast %169 : vector<1x2x128xf32> to vector<2x128xf32>
    %171 = vector.shape_cast %163 : vector<2x128xf32> to vector<1x2x128xf32>
    tpu.vector_store %arg5[%168, %c0_51, %c0_52], %171 {strides = array<i32>} : memref<8x2x128xf32, #tpu.memory_space<vmem>>, vector<1x2x128xf32>,
    %c3_i32 = arith.constant 3 : i32
    %172 = arith.index_cast %c3_i32 : i32 to index
    %c0_53 = arith.constant 0 : index
    %c0_54 = arith.constant 0 : index
    %173 = vector.load %arg1[%172, %c0_53, %c0_54] : memref<8x2x128xf32, #tpu.memory_space<vmem>>, vector<1x2x128xf32>
    %174 = vector.shape_cast %173 : vector<1x2x128xf32> to vector<2x128xf32>
    %175 = arith.mulf %11, %135 : vector<2x128xf32>
    %176 = arith.addf %175, %14 : vector<2x128xf32>
    %177 = arith.mulf %17, %145 : vector<2x128xf32>
    %178 = arith.addf %176, %177 : vector<2x128xf32>
    %179 = arith.mulf %140, %5 : vector<2x128xf32>
    %180 = arith.mulf %8, %174 : vector<2x128xf32>
    %181 = arith.addf %179, %180 : vector<2x128xf32>
    %182 = arith.mulf %178, %145 : vector<2x128xf32>
    %183 = arith.subf %181, %182 : vector<2x128xf32>
    %184 = arith.subf %183, %178 : vector<2x128xf32>
    %cst_55 = arith.constant 0.000000e+00 : f32
    %185 = vector.broadcast %cst_55 : f32 to vector<2x128xf32>
    %186 = arith.cmpf ogt, %184, %185 : vector<2x128xf32>
    %187 = arith.extui %186 : vector<2x128xi1> to vector<2x128xi32>
    %188 = arith.sitofp %187 : vector<2x128xi32> to vector<2x128xf32>
    %189 = arith.addf %188, %163 : vector<2x128xf32>
    %190 = arith.truncf %189 : vector<2x128xf32> to vector<2x128xbf16>
    %cst_56 = arith.constant dense<0.000000e+00> : vector<2x128xf32>
    %191 = tpu.matmul %190, %36, %cst_56 {dimension_numbers = #tpu.dot_dimension_numbers<[1], [0], [0], [1], [0, 0, 1, 1], [], []>} : vector<2x128xbf16>, vector<128x128xbf16>, vector<2x128xf32> -> vector<2x128xf32>
    %192 = arith.addf %191, %35 : vector<2x128xf32>
    %193 = arith.mulf %26, %153 : vector<2x128xf32>
    %194 = arith.addf %193, %29 : vector<2x128xf32>
    %195 = arith.mulf %32, %163 : vector<2x128xf32>
    %196 = arith.addf %194, %195 : vector<2x128xf32>
    %197 = arith.mulf %158, %20 : vector<2x128xf32>
    %198 = arith.mulf %23, %192 : vector<2x128xf32>
    %199 = arith.addf %197, %198 : vector<2x128xf32>
    %200 = arith.mulf %196, %163 : vector<2x128xf32>
    %201 = arith.subf %199, %200 : vector<2x128xf32>
    %202 = arith.subf %201, %196 : vector<2x128xf32>
    %cst_57 = arith.constant 0.000000e+00 : f32
    %203 = vector.broadcast %cst_57 : f32 to vector<2x128xf32>
    %204 = arith.cmpf ogt, %202, %203 : vector<2x128xf32>
    %205 = arith.extui %204 : vector<2x128xi1> to vector<2x128xi32>
    %206 = arith.sitofp %205 : vector<2x128xi32> to vector<2x128xf32>
    %207 = arith.index_cast %c3_i32 : i32 to index
    %c0_58 = arith.constant 0 : index
    %c0_59 = arith.constant 0 : index
    %208 = vector.load %arg4[%207, %c0_58, %c0_59] : memref<8x2x128xf32, #tpu.memory_space<vmem>>, vector<1x2x128xf32>
    %209 = vector.shape_cast %208 : vector<1x2x128xf32> to vector<2x128xf32>
    %210 = vector.shape_cast %188 : vector<2x128xf32> to vector<1x2x128xf32>
    tpu.vector_store %arg4[%207, %c0_58, %c0_59], %210 {strides = array<i32>} : memref<8x2x128xf32, #tpu.memory_space<vmem>>, vector<1x2x128xf32>,
    %211 = arith.index_cast %c3_i32 : i32 to index
    %c0_60 = arith.constant 0 : index
    %c0_61 = arith.constant 0 : index
    %212 = vector.load %arg5[%211, %c0_60, %c0_61] : memref<8x2x128xf32, #tpu.memory_space<vmem>>, vector<1x2x128xf32>
    %213 = vector.shape_cast %212 : vector<1x2x128xf32> to vector<2x128xf32>
    %214 = vector.shape_cast %206 : vector<2x128xf32> to vector<1x2x128xf32>
    tpu.vector_store %arg5[%211, %c0_60, %c0_61], %214 {strides = array<i32>} : memref<8x2x128xf32, #tpu.memory_space<vmem>>, vector<1x2x128xf32>,
    %c4_i32 = arith.constant 4 : i32
    %215 = arith.index_cast %c4_i32 : i32 to index
    %c0_62 = arith.constant 0 : index
    %c0_63 = arith.constant 0 : index
    %216 = vector.load %arg1[%215, %c0_62, %c0_63] : memref<8x2x128xf32, #tpu.memory_space<vmem>>, vector<1x2x128xf32>
    %217 = vector.shape_cast %216 : vector<1x2x128xf32> to vector<2x128xf32>
    %218 = arith.mulf %11, %178 : vector<2x128xf32>
    %219 = arith.addf %218, %14 : vector<2x128xf32>
    %220 = arith.mulf %17, %188 : vector<2x128xf32>
    %221 = arith.addf %219, %220 : vector<2x128xf32>
    %222 = arith.mulf %183, %5 : vector<2x128xf32>
    %223 = arith.mulf %8, %217 : vector<2x128xf32>
    %224 = arith.addf %222, %223 : vector<2x128xf32>
    %225 = arith.mulf %221, %188 : vector<2x128xf32>
    %226 = arith.subf %224, %225 : vector<2x128xf32>
    %227 = arith.subf %226, %221 : vector<2x128xf32>
    %cst_64 = arith.constant 0.000000e+00 : f32
    %228 = vector.broadcast %cst_64 : f32 to vector<2x128xf32>
    %229 = arith.cmpf ogt, %227, %228 : vector<2x128xf32>
    %230 = arith.extui %229 : vector<2x128xi1> to vector<2x128xi32>
    %231 = arith.sitofp %230 : vector<2x128xi32> to vector<2x128xf32>
    %232 = arith.addf %231, %206 : vector<2x128xf32>
    %233 = arith.truncf %232 : vector<2x128xf32> to vector<2x128xbf16>
    %cst_65 = arith.constant dense<0.000000e+00> : vector<2x128xf32>
    %234 = tpu.matmul %233, %36, %cst_65 {dimension_numbers = #tpu.dot_dimension_numbers<[1], [0], [0], [1], [0, 0, 1, 1], [], []>} : vector<2x128xbf16>, vector<128x128xbf16>, vector<2x128xf32> -> vector<2x128xf32>
    %235 = arith.addf %234, %35 : vector<2x128xf32>
    %236 = arith.mulf %26, %196 : vector<2x128xf32>
    %237 = arith.addf %236, %29 : vector<2x128xf32>
    %238 = arith.mulf %32, %206 : vector<2x128xf32>
    %239 = arith.addf %237, %238 : vector<2x128xf32>
    %240 = arith.mulf %201, %20 : vector<2x128xf32>
    %241 = arith.mulf %23, %235 : vector<2x128xf32>
    %242 = arith.addf %240, %241 : vector<2x128xf32>
    %243 = arith.mulf %239, %206 : vector<2x128xf32>
    %244 = arith.subf %242, %243 : vector<2x128xf32>
    %245 = arith.subf %244, %239 : vector<2x128xf32>
    %cst_66 = arith.constant 0.000000e+00 : f32
    %246 = vector.broadcast %cst_66 : f32 to vector<2x128xf32>
    %247 = arith.cmpf ogt, %245, %246 : vector<2x128xf32>
    %248 = arith.extui %247 : vector<2x128xi1> to vector<2x128xi32>
    %249 = arith.sitofp %248 : vector<2x128xi32> to vector<2x128xf32>
    %250 = arith.index_cast %c4_i32 : i32 to index
    %c0_67 = arith.constant 0 : index
    %c0_68 = arith.constant 0 : index
    %251 = vector.load %arg4[%250, %c0_67, %c0_68] : memref<8x2x128xf32, #tpu.memory_space<vmem>>, vector<1x2x128xf32>
    %252 = vector.shape_cast %251 : vector<1x2x128xf32> to vector<2x128xf32>
    %253 = vector.shape_cast %231 : vector<2x128xf32> to vector<1x2x128xf32>
    tpu.vector_store %arg4[%250, %c0_67, %c0_68], %253 {strides = array<i32>} : memref<8x2x128xf32, #tpu.memory_space<vmem>>, vector<1x2x128xf32>,
    %254 = arith.index_cast %c4_i32 : i32 to index
    %c0_69 = arith.constant 0 : index
    %c0_70 = arith.constant 0 : index
    %255 = vector.load %arg5[%254, %c0_69, %c0_70] : memref<8x2x128xf32, #tpu.memory_space<vmem>>, vector<1x2x128xf32>
    %256 = vector.shape_cast %255 : vector<1x2x128xf32> to vector<2x128xf32>
    %257 = vector.shape_cast %249 : vector<2x128xf32> to vector<1x2x128xf32>
    tpu.vector_store %arg5[%254, %c0_69, %c0_70], %257 {strides = array<i32>} : memref<8x2x128xf32, #tpu.memory_space<vmem>>, vector<1x2x128xf32>,
    %c5_i32 = arith.constant 5 : i32
    %258 = arith.index_cast %c5_i32 : i32 to index
    %c0_71 = arith.constant 0 : index
    %c0_72 = arith.constant 0 : index
    %259 = vector.load %arg1[%258, %c0_71, %c0_72] : memref<8x2x128xf32, #tpu.memory_space<vmem>>, vector<1x2x128xf32>
    %260 = vector.shape_cast %259 : vector<1x2x128xf32> to vector<2x128xf32>
    %261 = arith.mulf %11, %221 : vector<2x128xf32>
    %262 = arith.addf %261, %14 : vector<2x128xf32>
    %263 = arith.mulf %17, %231 : vector<2x128xf32>
    %264 = arith.addf %262, %263 : vector<2x128xf32>
    %265 = arith.mulf %226, %5 : vector<2x128xf32>
    %266 = arith.mulf %8, %260 : vector<2x128xf32>
    %267 = arith.addf %265, %266 : vector<2x128xf32>
    %268 = arith.mulf %264, %231 : vector<2x128xf32>
    %269 = arith.subf %267, %268 : vector<2x128xf32>
    %270 = arith.subf %269, %264 : vector<2x128xf32>
    %cst_73 = arith.constant 0.000000e+00 : f32
    %271 = vector.broadcast %cst_73 : f32 to vector<2x128xf32>
    %272 = arith.cmpf ogt, %270, %271 : vector<2x128xf32>
    %273 = arith.extui %272 : vector<2x128xi1> to vector<2x128xi32>
    %274 = arith.sitofp %273 : vector<2x128xi32> to vector<2x128xf32>
    %275 = arith.addf %274, %249 : vector<2x128xf32>
    %276 = arith.truncf %275 : vector<2x128xf32> to vector<2x128xbf16>
    %cst_74 = arith.constant dense<0.000000e+00> : vector<2x128xf32>
    %277 = tpu.matmul %276, %36, %cst_74 {dimension_numbers = #tpu.dot_dimension_numbers<[1], [0], [0], [1], [0, 0, 1, 1], [], []>} : vector<2x128xbf16>, vector<128x128xbf16>, vector<2x128xf32> -> vector<2x128xf32>
    %278 = arith.addf %277, %35 : vector<2x128xf32>
    %279 = arith.mulf %26, %239 : vector<2x128xf32>
    %280 = arith.addf %279, %29 : vector<2x128xf32>
    %281 = arith.mulf %32, %249 : vector<2x128xf32>
    %282 = arith.addf %280, %281 : vector<2x128xf32>
    %283 = arith.mulf %244, %20 : vector<2x128xf32>
    %284 = arith.mulf %23, %278 : vector<2x128xf32>
    %285 = arith.addf %283, %284 : vector<2x128xf32>
    %286 = arith.mulf %282, %249 : vector<2x128xf32>
    %287 = arith.subf %285, %286 : vector<2x128xf32>
    %288 = arith.subf %287, %282 : vector<2x128xf32>
    %cst_75 = arith.constant 0.000000e+00 : f32
    %289 = vector.broadcast %cst_75 : f32 to vector<2x128xf32>
    %290 = arith.cmpf ogt, %288, %289 : vector<2x128xf32>
    %291 = arith.extui %290 : vector<2x128xi1> to vector<2x128xi32>
    %292 = arith.sitofp %291 : vector<2x128xi32> to vector<2x128xf32>
    %293 = arith.index_cast %c5_i32 : i32 to index
    %c0_76 = arith.constant 0 : index
    %c0_77 = arith.constant 0 : index
    %294 = vector.load %arg4[%293, %c0_76, %c0_77] : memref<8x2x128xf32, #tpu.memory_space<vmem>>, vector<1x2x128xf32>
    %295 = vector.shape_cast %294 : vector<1x2x128xf32> to vector<2x128xf32>
    %296 = vector.shape_cast %274 : vector<2x128xf32> to vector<1x2x128xf32>
    tpu.vector_store %arg4[%293, %c0_76, %c0_77], %296 {strides = array<i32>} : memref<8x2x128xf32, #tpu.memory_space<vmem>>, vector<1x2x128xf32>,
    %297 = arith.index_cast %c5_i32 : i32 to index
    %c0_78 = arith.constant 0 : index
    %c0_79 = arith.constant 0 : index
    %298 = vector.load %arg5[%297, %c0_78, %c0_79] : memref<8x2x128xf32, #tpu.memory_space<vmem>>, vector<1x2x128xf32>
    %299 = vector.shape_cast %298 : vector<1x2x128xf32> to vector<2x128xf32>
    %300 = vector.shape_cast %292 : vector<2x128xf32> to vector<1x2x128xf32>
    tpu.vector_store %arg5[%297, %c0_78, %c0_79], %300 {strides = array<i32>} : memref<8x2x128xf32, #tpu.memory_space<vmem>>, vector<1x2x128xf32>,
    %c6_i32 = arith.constant 6 : i32
    %301 = arith.index_cast %c6_i32 : i32 to index
    %c0_80 = arith.constant 0 : index
    %c0_81 = arith.constant 0 : index
    %302 = vector.load %arg1[%301, %c0_80, %c0_81] : memref<8x2x128xf32, #tpu.memory_space<vmem>>, vector<1x2x128xf32>
    %303 = vector.shape_cast %302 : vector<1x2x128xf32> to vector<2x128xf32>
    %304 = arith.mulf %11, %264 : vector<2x128xf32>
    %305 = arith.addf %304, %14 : vector<2x128xf32>
    %306 = arith.mulf %17, %274 : vector<2x128xf32>
    %307 = arith.addf %305, %306 : vector<2x128xf32>
    %308 = arith.mulf %269, %5 : vector<2x128xf32>
    %309 = arith.mulf %8, %303 : vector<2x128xf32>
    %310 = arith.addf %308, %309 : vector<2x128xf32>
    %311 = arith.mulf %307, %274 : vector<2x128xf32>
    %312 = arith.subf %310, %311 : vector<2x128xf32>
    %313 = arith.subf %312, %307 : vector<2x128xf32>
    %cst_82 = arith.constant 0.000000e+00 : f32
    %314 = vector.broadcast %cst_82 : f32 to vector<2x128xf32>
    %315 = arith.cmpf ogt, %313, %314 : vector<2x128xf32>
    %316 = arith.extui %315 : vector<2x128xi1> to vector<2x128xi32>
    %317 = arith.sitofp %316 : vector<2x128xi32> to vector<2x128xf32>
    %318 = arith.addf %317, %292 : vector<2x128xf32>
    %319 = arith.truncf %318 : vector<2x128xf32> to vector<2x128xbf16>
    %cst_83 = arith.constant dense<0.000000e+00> : vector<2x128xf32>
    %320 = tpu.matmul %319, %36, %cst_83 {dimension_numbers = #tpu.dot_dimension_numbers<[1], [0], [0], [1], [0, 0, 1, 1], [], []>} : vector<2x128xbf16>, vector<128x128xbf16>, vector<2x128xf32> -> vector<2x128xf32>
    %321 = arith.addf %320, %35 : vector<2x128xf32>
    %322 = arith.mulf %26, %282 : vector<2x128xf32>
    %323 = arith.addf %322, %29 : vector<2x128xf32>
    %324 = arith.mulf %32, %292 : vector<2x128xf32>
    %325 = arith.addf %323, %324 : vector<2x128xf32>
    %326 = arith.mulf %287, %20 : vector<2x128xf32>
    %327 = arith.mulf %23, %321 : vector<2x128xf32>
    %328 = arith.addf %326, %327 : vector<2x128xf32>
    %329 = arith.mulf %325, %292 : vector<2x128xf32>
    %330 = arith.subf %328, %329 : vector<2x128xf32>
    %331 = arith.subf %330, %325 : vector<2x128xf32>
    %cst_84 = arith.constant 0.000000e+00 : f32
    %332 = vector.broadcast %cst_84 : f32 to vector<2x128xf32>
    %333 = arith.cmpf ogt, %331, %332 : vector<2x128xf32>
    %334 = arith.extui %333 : vector<2x128xi1> to vector<2x128xi32>
    %335 = arith.sitofp %334 : vector<2x128xi32> to vector<2x128xf32>
    %336 = arith.index_cast %c6_i32 : i32 to index
    %c0_85 = arith.constant 0 : index
    %c0_86 = arith.constant 0 : index
    %337 = vector.load %arg4[%336, %c0_85, %c0_86] : memref<8x2x128xf32, #tpu.memory_space<vmem>>, vector<1x2x128xf32>
    %338 = vector.shape_cast %337 : vector<1x2x128xf32> to vector<2x128xf32>
    %339 = vector.shape_cast %317 : vector<2x128xf32> to vector<1x2x128xf32>
    tpu.vector_store %arg4[%336, %c0_85, %c0_86], %339 {strides = array<i32>} : memref<8x2x128xf32, #tpu.memory_space<vmem>>, vector<1x2x128xf32>,
    %340 = arith.index_cast %c6_i32 : i32 to index
    %c0_87 = arith.constant 0 : index
    %c0_88 = arith.constant 0 : index
    %341 = vector.load %arg5[%340, %c0_87, %c0_88] : memref<8x2x128xf32, #tpu.memory_space<vmem>>, vector<1x2x128xf32>
    %342 = vector.shape_cast %341 : vector<1x2x128xf32> to vector<2x128xf32>
    %343 = vector.shape_cast %335 : vector<2x128xf32> to vector<1x2x128xf32>
    tpu.vector_store %arg5[%340, %c0_87, %c0_88], %343 {strides = array<i32>} : memref<8x2x128xf32, #tpu.memory_space<vmem>>, vector<1x2x128xf32>,
    %c7_i32 = arith.constant 7 : i32
    %344 = arith.index_cast %c7_i32 : i32 to index
    %c0_89 = arith.constant 0 : index
    %c0_90 = arith.constant 0 : index
    %345 = vector.load %arg1[%344, %c0_89, %c0_90] : memref<8x2x128xf32, #tpu.memory_space<vmem>>, vector<1x2x128xf32>
    %346 = vector.shape_cast %345 : vector<1x2x128xf32> to vector<2x128xf32>
    %347 = arith.mulf %11, %307 : vector<2x128xf32>
    %348 = arith.addf %347, %14 : vector<2x128xf32>
    %349 = arith.mulf %17, %317 : vector<2x128xf32>
    %350 = arith.addf %348, %349 : vector<2x128xf32>
    %351 = arith.mulf %312, %5 : vector<2x128xf32>
    %352 = arith.mulf %8, %346 : vector<2x128xf32>
    %353 = arith.addf %351, %352 : vector<2x128xf32>
    %354 = arith.mulf %350, %317 : vector<2x128xf32>
    %355 = arith.subf %353, %354 : vector<2x128xf32>
    %356 = arith.subf %355, %350 : vector<2x128xf32>
    %cst_91 = arith.constant 0.000000e+00 : f32
    %357 = vector.broadcast %cst_91 : f32 to vector<2x128xf32>
    %358 = arith.cmpf ogt, %356, %357 : vector<2x128xf32>
    %359 = arith.extui %358 : vector<2x128xi1> to vector<2x128xi32>
    %360 = arith.sitofp %359 : vector<2x128xi32> to vector<2x128xf32>
    %361 = arith.addf %360, %335 : vector<2x128xf32>
    %362 = arith.truncf %361 : vector<2x128xf32> to vector<2x128xbf16>
    %cst_92 = arith.constant dense<0.000000e+00> : vector<2x128xf32>
    %363 = tpu.matmul %362, %36, %cst_92 {dimension_numbers = #tpu.dot_dimension_numbers<[1], [0], [0], [1], [0, 0, 1, 1], [], []>} : vector<2x128xbf16>, vector<128x128xbf16>, vector<2x128xf32> -> vector<2x128xf32>
    %364 = arith.addf %363, %35 : vector<2x128xf32>
    %365 = arith.mulf %26, %325 : vector<2x128xf32>
    %366 = arith.addf %365, %29 : vector<2x128xf32>
    %367 = arith.mulf %32, %335 : vector<2x128xf32>
    %368 = arith.addf %366, %367 : vector<2x128xf32>
    %369 = arith.mulf %330, %20 : vector<2x128xf32>
    %370 = arith.mulf %23, %364 : vector<2x128xf32>
    %371 = arith.addf %369, %370 : vector<2x128xf32>
    %372 = arith.mulf %368, %335 : vector<2x128xf32>
    %373 = arith.subf %371, %372 : vector<2x128xf32>
    %374 = arith.subf %373, %368 : vector<2x128xf32>
    %cst_93 = arith.constant 0.000000e+00 : f32
    %375 = vector.broadcast %cst_93 : f32 to vector<2x128xf32>
    %376 = arith.cmpf ogt, %374, %375 : vector<2x128xf32>
    %377 = arith.extui %376 : vector<2x128xi1> to vector<2x128xi32>
    %378 = arith.sitofp %377 : vector<2x128xi32> to vector<2x128xf32>
    %379 = arith.index_cast %c7_i32 : i32 to index
    %c0_94 = arith.constant 0 : index
    %c0_95 = arith.constant 0 : index
    %380 = vector.load %arg4[%379, %c0_94, %c0_95] : memref<8x2x128xf32, #tpu.memory_space<vmem>>, vector<1x2x128xf32>
    %381 = vector.shape_cast %380 : vector<1x2x128xf32> to vector<2x128xf32>
    %382 = vector.shape_cast %360 : vector<2x128xf32> to vector<1x2x128xf32>
    tpu.vector_store %arg4[%379, %c0_94, %c0_95], %382 {strides = array<i32>} : memref<8x2x128xf32, #tpu.memory_space<vmem>>, vector<1x2x128xf32>,
    %383 = arith.index_cast %c7_i32 : i32 to index
    %c0_96 = arith.constant 0 : index
    %c0_97 = arith.constant 0 : index
    %384 = vector.load %arg5[%383, %c0_96, %c0_97] : memref<8x2x128xf32, #tpu.memory_space<vmem>>, vector<1x2x128xf32>
    %385 = vector.shape_cast %384 : vector<1x2x128xf32> to vector<2x128xf32>
    %386 = vector.shape_cast %378 : vector<2x128xf32> to vector<1x2x128xf32>
    tpu.vector_store %arg5[%383, %c0_96, %c0_97], %386 {strides = array<i32>} : memref<8x2x128xf32, #tpu.memory_space<vmem>>, vector<1x2x128xf32>,
    %c8_i32 = arith.constant 8 : i32
    %c0_98 = arith.constant 0 : index
    %c0_99 = arith.constant 0 : index
    %387 = vector.load %arg6[%c0_98, %c0_99] : memref<2x128xf32, #tpu.memory_space<vmem>>, vector<2x128xf32>
    tpu.vector_store %arg6[%c0_98, %c0_99], %355 {strides = array<i32>} : memref<2x128xf32, #tpu.memory_space<vmem>>, vector<2x128xf32>,
    %c0_100 = arith.constant 0 : index
    %c0_101 = arith.constant 0 : index
    %388 = vector.load %arg7[%c0_100, %c0_101] : memref<2x128xf32, #tpu.memory_space<vmem>>, vector<2x128xf32>
    tpu.vector_store %arg7[%c0_100, %c0_101], %350 {strides = array<i32>} : memref<2x128xf32, #tpu.memory_space<vmem>>, vector<2x128xf32>,
    %c0_102 = arith.constant 0 : index
    %c0_103 = arith.constant 0 : index
    %389 = vector.load %arg8[%c0_102, %c0_103] : memref<2x128xf32, #tpu.memory_space<vmem>>, vector<2x128xf32>
    tpu.vector_store %arg8[%c0_102, %c0_103], %360 {strides = array<i32>} : memref<2x128xf32, #tpu.memory_space<vmem>>, vector<2x128xf32>,
    %c0_104 = arith.constant 0 : index
    %c0_105 = arith.constant 0 : index
    %390 = vector.load %arg9[%c0_104, %c0_105] : memref<2x128xf32, #tpu.memory_space<vmem>>, vector<2x128xf32>
    tpu.vector_store %arg9[%c0_104, %c0_105], %373 {strides = array<i32>} : memref<2x128xf32, #tpu.memory_space<vmem>>, vector<2x128xf32>,
    %c0_106 = arith.constant 0 : index
    %c0_107 = arith.constant 0 : index
    %391 = vector.load %arg10[%c0_106, %c0_107] : memref<2x128xf32, #tpu.memory_space<vmem>>, vector<2x128xf32>
    tpu.vector_store %arg10[%c0_106, %c0_107], %368 {strides = array<i32>} : memref<2x128xf32, #tpu.memory_space<vmem>>, vector<2x128xf32>,
    %c0_108 = arith.constant 0 : index
    %c0_109 = arith.constant 0 : index
    %392 = vector.load %arg11[%c0_108, %c0_109] : memref<2x128xf32, #tpu.memory_space<vmem>>, vector<2x128xf32>
    tpu.vector_store %arg11[%c0_108, %c0_109], %378 {strides = array<i32>} : memref<2x128xf32, #tpu.memory_space<vmem>>, vector<2x128xf32>,
    return
  }
  func.func @transform_0(%arg0: i32) -> (i32, i32, i32) {
    %c0_i32 = arith.constant 0 : i32
    %c0_i32_0 = arith.constant 0 : i32
    %c0_i32_1 = arith.constant 0 : i32
    return %arg0, %c0_i32, %c0_i32_0 : i32, i32, i32
  }
  func.func @transform_1(%arg0: i32) -> (i32, i32) {
    %c0_i32 = arith.constant 0 : i32
    %c0_i32_0 = arith.constant 0 : i32
    %c0_i32_1 = arith.constant 0 : i32
    return %c0_i32, %c0_i32_0 : i32, i32
  }
  func.func @transform_2(%arg0: i32) -> (i32, i32) {
    %c0_i32 = arith.constant 0 : i32
    %c0_i32_0 = arith.constant 0 : i32
    %c0_i32_1 = arith.constant 0 : i32
    return %c0_i32, %c0_i32_0 : i32, i32
  }
  func.func @transform_3(%arg0: i32) -> (i32, i32, i32) {
    %c0_i32 = arith.constant 0 : i32
    %c0_i32_0 = arith.constant 0 : i32
    %c0_i32_1 = arith.constant 0 : i32
    return %arg0, %c0_i32, %c0_i32_0 : i32, i32, i32
  }
  func.func @transform_4(%arg0: i32) -> (i32, i32, i32) {
    %c0_i32 = arith.constant 0 : i32
    %c0_i32_0 = arith.constant 0 : i32
    %c0_i32_1 = arith.constant 0 : i32
    return %arg0, %c0_i32, %c0_i32_0 : i32, i32, i32
  }
}

</mosaic_0001>

<bundles_post_ra>
// kernel: srnn_forward.1
= control target key start
LH: loop header
LB: loop body
LE: loop exit
PB: predicated region body
PF: predicated region fallthrough
CT: control target
= control target key end

     0   :  { %v1054_v0 = vmov 0.0   ;;  %vm1055_vm0 = vmmov 0   ;;  %v1056_v2 = vmov 0.028   ;;  %s1511_s1 = inlined_call_operand.vmem [shape: bf16[128,128], index: 1, kind: input, shape index: {}]   ;;  %s1512_s2 = inlined_call_operand.vmem [shape: f32[16,128], index: 2, kind: input, shape index: {}]   ;;  %s1513_s0 = inlined_call_operand.vmem [shape: f32[8,2,128], index: 0, kind: input, shape index: {}]   ;;  %s1514_s3 = inlined_call_operand.vmem [shape: f32[8,2,128], index: 3, kind: output, shape index: {0}]   ;;  %s1515_s4 = inlined_call_operand.vmem [shape: f32[8,2,128], index: 4, kind: output, shape index: {1}]  }
   0x1   :  { %883 = vmatprep.subr.bf16.mxu0 %v1054_v0  ;;  %21 = vst [vmem:[#allocation2] sm:$0x3] %v1054_v0  ;;  %22 = vst [vmem:[#allocation4] sm:$0x3] %v1054_v0  ;;  %v1090_v1 = vld [vmem:[%s1511_s1 + $0x38] sm:$0xff]   ;;  %899 = vmatprep.mubr.msk.bf16.mxu0 %vm1055_vm0, %v1054_v0  ;;  %v1101_v3 = vld [vmem:[%s1511_s1 + $0x30] sm:$0xff]  }
   0x2   :  { %24 = vst [vmem:[#allocation5] sm:$0x3] %v1054_v0  ;;  %25 = vst [vmem:[#allocation7] sm:$0x3] %v1054_v0  ;;  %903 = vmatprep.subr.bf16.mxu1 %v1054_v0  ;;  %919 = vmatprep.mubr.msk.bf16.mxu1 %vm1055_vm0, %v1054_v0  ;;  %v1110_v4 = vld [vmem:[%s1511_s1 + $0x28] sm:$0xff]   ;;  %v1118_v5 = vld [vmem:[%s1511_s1 + $0x20] sm:$0xff]  }
   0x3   :  { %23 = vst [vmem:[#allocation3] sm:$0x3] %v1056_v2  ;;  %26 = vst [vmem:[#allocation6] sm:$0x3] %v1056_v2  ;;  %884 = vmatpush3.bf16.msra.mxu0 %v1090_v1  ;;  %904 = vmatpush3.bf16.msra.mxu1 %v1090_v1  ;;  %v1123_v6 = vld [vmem:[%s1512_s2] ss:$0 sm:$0xff] }
   0x4   :  { %885 = vmatprep.subr.bf16.mxu0 %v1054_v0  ;;  %905 = vmatprep.subr.bf16.mxu1 %v1054_v0  ;;  %v1128_v7 = vld [vmem:[%s1512_s2 + $0x2] ss:$0 sm:$0xff]  ;;  %v1133_v8 = vld [vmem:[%s1512_s2 + $0x1] ss:$0 sm:$0xff]  ;;  %v1138_v9 = vld [vmem:[%s1512_s2 + $0x3] ss:$0 sm:$0xff] }
   0x5   :  { %v1143_v10 = vld [vmem:[%s1512_s2 + $0x4] ss:$0 sm:$0xff]  ;;  %v104_v14 = vld [vmem:[%s1513_s0] sm:$0x3]  ;;  %v1161_v20 = vld [vmem:[%s1511_s1 + $0x18] sm:$0xff]  }
   0x6   :  { %v110_v18 = vmul.f32 %v1133_v8, %v104_v14  ;;  %v1170_v24 = vld [vmem:[%s1511_s1 + $0x10] sm:$0xff]   ;;  %v1180_v28 = vld [vmem:[%s1511_s1 + $0x8] sm:$0xff]   ;;  %v1198_v34 = vld [vmem:[%s1511_s1] sm:$0xff]  }
   0x7   :  { %886 = vmatpush3.bf16.msra.mxu0 %v1101_v3  ;;  %906 = vmatpush3.bf16.msra.mxu1 %v1101_v3  ;;  %v776_v38 = vld [vmem:[%s1513_s0 + $0x2] sm:$0x3]  ;;  %v1241_v45 = vld [vmem:[%s1512_s2 + $0x7] ss:$0 sm:$0xff]  ;;  %v1247_v48 = vld [vmem:[%s1512_s2 + $0x9] ss:$0 sm:$0xff] }
   0x8   :  { %887 = vmatprep.subr.bf16.mxu0 %v1054_v0  ;;  %907 = vmatprep.subr.bf16.mxu1 %v1054_v0  ;;  %v98_v11 = vld [vmem:[#allocation2] sm:$0x3]  ;;  %v100_v13 = vld [vmem:[#allocation4] sm:$0x3]  ;;  %v230_v40 = vmul.f32 %v776_v38, %v1133_v8  ;;  %v1252_v49 = vld [vmem:[%s1512_s2 + $0x8] ss:$0 sm:$0xff] }
   0x9   :  { %v107_v16 = vmul.f32 %v1143_v10, %v100_v13  ;;  %v109_v17 = vmul.f32 %v1123_v6, %v98_v11  ;;  %v1182_v29 = vld [vmem:[#allocation7] sm:$0x3]  ;;  %v1260_v52 = vld [vmem:[%s1512_s2 + $0x5] ss:$0 sm:$0xff]  ;;  %v101_v54 = vld [vmem:[#allocation5] sm:$0x3] }
   0xa   :  { %v99_v12 = vld [vmem:[#allocation3] sm:$0x3]  ;;  %v102_v46 = vld [vmem:[#allocation6] sm:$0x3]  ;;  %v210_v50 = vmul.f32 %v1247_v48, %v1182_v29  ;;  %v1265_v53 = vld [vmem:[%s1512_s2 + $0xa] ss:$0 sm:$0xff]  ;;  %v212_v59 = vmul.f32 %v1260_v52, %v101_v54 }
   0xb   :  { %888 = vmatpush3.bf16.msra.mxu0 %v1110_v4  ;;  %908 = vmatpush3.bf16.msra.mxu1 %v1110_v4  ;;  %v105_v15 = vmul.f32 %v1128_v7, %v99_v12  ;;  %v111_v22 = vadd.f32 %v110_v18, %v109_v17  ;;  %v208_v47 = vmul.f32 %v1241_v45, %v102_v46  ;;  %v1270_v56 = vld [vmem:[%s1512_s2 + $0x6] ss:$0 sm:$0xff] }
   0xc   :  { %889 = vmatprep.subr.bf16.mxu0 %v1054_v0  ;;  %909 = vmatprep.subr.bf16.mxu1 %v1054_v0 }
   0xd   :  { %v106_v19 = vadd.f32 %v1138_v9, %v105_v15  ;;  %v209_v51 = vadd.f32 %v1252_v49, %v208_v47 }
   0xf   :  { %890 = vmatpush3.bf16.msra.mxu0 %v1118_v5  ;;  %910 = vmatpush3.bf16.msra.mxu1 %v1118_v5  ;;  %v108_v21 = vadd.f32 %v107_v16, %v106_v19  ;;  %v211_v55 = vadd.f32 %v210_v50, %v209_v51 }
  0x10   :  { %891 = vmatprep.subr.bf16.mxu0 %v1054_v0  ;;  %911 = vmatprep.subr.bf16.mxu1 %v1054_v0 }
  0x11   :  { %v112_v23 = vmul.f32 %v108_v21, %v100_v13  ;;  %v225_v26 = vmul.f32 %v1128_v7, %v108_v21  ;;  %v215_v62 = vmul.f32 %v211_v55, %v1182_v29 }
  0x13   :  { %892 = vmatpush3.bf16.msra.mxu0 %v1161_v20  ;;  %912 = vmatpush3.bf16.msra.mxu1 %v1161_v20  ;;  %v113_v25 = vsub.f32 %v111_v22, %v112_v23  ;;  %v226_v30 = vadd.f32 %v1138_v9, %v225_v26 }
  0x14   :  { %893 = vmatprep.subr.bf16.mxu0 %v1054_v0  ;;  %913 = vmatprep.subr.bf16.mxu1 %v1054_v0 }
  0x15   :  { %v114_v27 = vsub.f32 %v113_v25, %v108_v21  ;;  %v229_v37 = vmul.f32 %v1123_v6, %v113_v25  ;;  %v781_v21 = vld [vmem:[%s1513_s0 + $0x4] sm:$0x3] }
  0x16   :  { %v304_v25 = vmul.f32 %v781_v21, %v1133_v8 }
  0x17   :  { %894 = vmatpush3.bf16.msra.mxu0 %v1170_v24  ;;  %914 = vmatpush3.bf16.msra.mxu1 %v1170_v24  ;;  %vm115_vm1 = vcmp.gt.f32.partialorder %v114_v27, 0.0  ;;  %v231_v41 = vadd.f32 %v230_v40, %v229_v37 }
  0x18   :  { %895 = vmatprep.subr.bf16.mxu0 %v1054_v0  ;;  %915 = vmatprep.subr.bf16.mxu1 %v1054_v0  ;;  %v766_v31 = vsel %vm115_vm1, 1.0, %v1054_v0 }
  0x19   :  { %v118_v32 = vadd.f32 %v766_v31, %v1182_v29  ;;  %221 = vst [vmem:[%s1514_s3] sm:$0x3] %v766_v31  ;;  %v227_v33 = vmul.f32 %v766_v31, %v1143_v10 }
  0x1b   :  { %896 = vmatpush3.bf16.msra.mxu0 %v1180_v28  ;;  %916 = vmatpush3.bf16.msra.mxu1 %v1180_v28  ;;  %v1202_v35 = vadd.f32 %v227_v33, %v226_v30  ;;  %v119_v36 = vpack.c.bf16 %v118_v32, %v118_v32  ;;  %v280_v32 = vmul.f32 %v1241_v45, %v211_v55 }
  0x1c   :  { %897 = vmatprep.subr.bf16.mxu0 %v1054_v0  ;;  %917 = vmatprep.subr.bf16.mxu1 %v1054_v0 }
  0x1d   :  { %v232_v39 = vmul.f32 %v766_v31, %v1202_v35  ;;  %v299_v17 = vmul.f32 %v1128_v7, %v1202_v35 }
  0x1f   :  { %898 = vmatpush3.bf16.msra.mxu0 %v1198_v34  ;;  %918 = vmatpush3.bf16.msra.mxu1 %v1198_v34  ;;  %v233_v42 = vsub.f32 %v231_v41, %v232_v39  ;;  %v300_v18 = vadd.f32 %v1138_v9, %v299_v17 }
  0x20   :  { %923 = vmatprep.subr.bf16.mxu0 %v1054_v0  ;;  %943 = vmatprep.subr.bf16.mxu1 %v1054_v0 }
  0x21   :  { %v234_v43 = vsub.f32 %v233_v42, %v1202_v35  ;;  %v303_v23 = vmul.f32 %v1123_v6, %v233_v42  ;;  %v281_v35 = vadd.f32 %v1252_v49, %v280_v32 }
  0x22   :  { %900 = vmatmul.mubr.bf16.vlgmr.msra.gmra.mxu0 %v119_v36 }
  0x23   :  { %924 = vmatpush3.bf16.msra.mxu0 %v1090_v1  ;;  %939 = vmatprep.mubr.msk.bf16.mxu0 %vm1055_vm0, %v1054_v0  ;;  %vm235_vm2 = vcmp.gt.f32.partialorder %v234_v43, 0.0  ;;  %v305_v26 = vadd.f32 %v304_v25, %v303_v23 }
  0x24   :  { %925 = vmatprep.subr.bf16.mxu0 %v1054_v0  ;;  %v777_v44 = vsel %vm235_vm2, 1.0, %v1054_v0 }
  0x25   :  { %779 = vst [vmem:[%s1514_s3 + $0x2] sm:$0x3] %v777_v44  ;;  %v301_v19 = vmul.f32 %v777_v44, %v1143_v10 }
  0x27   :  { %926 = vmatpush3.bf16.msra.mxu0 %v1101_v3  ;;  %v302_v22 = vadd.f32 %v301_v19, %v300_v18 }
  0x28   :  { %927 = vmatprep.subr.bf16.mxu0 %v1054_v0 }
  0x29   :  { %v306_v27 = vmul.f32 %v777_v44, %v302_v22 }
  0x2b   :  { %928 = vmatpush3.bf16.msra.mxu0 %v1110_v4  ;;  %v307_v29 = vsub.f32 %v305_v26, %v306_v27 }
  0x2c   :  { %929 = vmatprep.subr.bf16.mxu0 %v1054_v0 }
  0x2d   :  { %v308_v30 = vsub.f32 %v307_v29, %v302_v22 }
  0x2f   :  { %930 = vmatpush3.bf16.msra.mxu0 %v1118_v5  ;;  %vm309_vm4 = vcmp.gt.f32.partialorder %v308_v30, 0.0 }
  0x30   :  { %931 = vmatprep.subr.bf16.mxu0 %v1054_v0  ;;  %v782_v31 = vsel %vm309_vm4, 1.0, %v1054_v0 }
  0x31   :  { %784 = vst [vmem:[%s1514_s3 + $0x4] sm:$0x3] %v782_v31 }
  0x33   :  { %932 = vmatpush3.bf16.msra.mxu0 %v1161_v20 }
  0x34   :  { %933 = vmatprep.subr.bf16.mxu0 %v1054_v0 }
  0x37   :  { %934 = vmatpush3.bf16.msra.mxu0 %v1170_v24 }
  0x38   :  { %935 = vmatprep.subr.bf16.mxu0 %v1054_v0 }
  0x3b   :  { %936 = vmatpush3.bf16.msra.mxu0 %v1180_v28 }
  0x3c   :  { %937 = vmatprep.subr.bf16.mxu0 %v1054_v0 }
  0x3f   :  { %938 = vmatpush3.bf16.msra.mxu0 %v1198_v34 }
  0x40   :  { %963 = vmatprep.subr.bf16.mxu0 %v1054_v0 }
  0xe2   :  { %v202_v57 = vpop.f32.mrf.mxu0 }
  0xe3   :  { %v203_v58 = vadd.f32 %v1265_v53, %v202_v57  ;;  %v373_v57 = vmul.f32 %v1128_v7, %v302_v22 }
  0xe4   :  { %v901_v60 = vpop.f32.mrf.mxu0 }
  0xe5   :  { %v213_v61 = vmul.f32 %v1270_v56, %v203_v58  ;;  %v374_v58 = vadd.f32 %v1138_v9, %v373_v57 }
  0xe6   :  { %v205_v63 = vpop.f32.mrf.mxu0 }
  0xe7   :  { %v214_v2 = vadd.f32 %v213_v61, %v212_v59  ;;  %v375_v59 = vmul.f32 %v782_v31, %v1143_v10  ;;  %v377_v61 = vmul.f32 %v1123_v6, %v307_v29 }
  0xe8   :  { %v902_v11 = vpop.f32.mrf.mxu0 }
  0xe9   :  { %v216_v12 = vsub.f32 %v214_v2, %v215_v62  ;;  %v376_v60 = vadd.f32 %v375_v59, %v374_v58  ;;  %v786_v62 = vld [vmem:[%s1513_s0 + $0x6] sm:$0x3] }
  0xea   :  { %v378_v2 = vmul.f32 %v786_v62, %v1133_v8 }
  0xeb   :  { %v217_v13 = vsub.f32 %v216_v12, %v211_v55  ;;  %v284_v40 = vmul.f32 %v1260_v52, %v216_v12  ;;  %v380_v63 = vmul.f32 %v782_v31, %v376_v60 }
  0xec   :  { %v379_v11 = vadd.f32 %v378_v2, %v377_v61 }
  0xed   :  { %vm218_vm3 = vcmp.gt.f32.partialorder %v217_v13, 0.0 }
  0xee   :  { %v775_v14 = vsel %vm218_vm3, 1.0, %v1054_v0  ;;  %v381_v12 = vsub.f32 %v379_v11, %v380_v63 }
  0xef   :  { %222 = vst [vmem:[%s1515_s4] sm:$0x3] %v775_v14  ;;  %v238_v15 = vadd.f32 %v777_v44, %v775_v14  ;;  %v282_v33 = vmul.f32 %v775_v14, %v1247_v48 }
  0xf0   :  { %v382_v13 = vsub.f32 %v381_v12, %v376_v60 }
  0xf1   :  { %v239_v16 = vpack.c.bf16 %v238_v15, %v238_v15  ;;  %v283_v38 = vadd.f32 %v282_v33, %v281_v35 }
  0xf2   :  { %vm383_vm6 = vcmp.gt.f32.partialorder %v382_v13, 0.0 }
  0xf3   :  { %920 = vmatmul.mubr.bf16.vlgmr.msra.gmra.mxu1 %v239_v16  ;;  %v287_v44 = vmul.f32 %v775_v14, %v283_v38  ;;  %v787_v14 = vsel %vm383_vm6, 1.0, %v1054_v0  ;;  %v354_v15 = vmul.f32 %v1241_v45, %v283_v38 }
  0xf4   :  { %944 = vmatpush3.bf16.msra.mxu1 %v1090_v1  ;;  %959 = vmatprep.mubr.msk.bf16.mxu1 %vm1055_vm0, %v1054_v0  ;;  %789 = vst [vmem:[%s1514_s3 + $0x6] sm:$0x3] %v787_v14 }
  0xf5   :  { %945 = vmatprep.subr.bf16.mxu1 %v1054_v0  ;;  %v355_v17 = vadd.f32 %v1252_v49, %v354_v15 }
  0xf8   :  { %946 = vmatpush3.bf16.msra.mxu1 %v1101_v3 }
  0xf9   :  { %947 = vmatprep.subr.bf16.mxu1 %v1054_v0 }
  0xfc   :  { %948 = vmatpush3.bf16.msra.mxu1 %v1110_v4 }
  0xfd   :  { %949 = vmatprep.subr.bf16.mxu1 %v1054_v0 }
 0x100   :  { %950 = vmatpush3.bf16.msra.mxu1 %v1118_v5 }
 0x101   :  { %951 = vmatprep.subr.bf16.mxu1 %v1054_v0 }
 0x104   :  { %952 = vmatpush3.bf16.msra.mxu1 %v1161_v20 }
 0x105   :  { %953 = vmatprep.subr.bf16.mxu1 %v1054_v0 }
 0x108   :  { %954 = vmatpush3.bf16.msra.mxu1 %v1170_v24 }
 0x109   :  { %955 = vmatprep.subr.bf16.mxu1 %v1054_v0 }
 0x10c   :  { %956 = vmatpush3.bf16.msra.mxu1 %v1180_v28 }
 0x10d   :  { %957 = vmatprep.subr.bf16.mxu1 %v1054_v0 }
 0x110   :  { %958 = vmatpush3.bf16.msra.mxu1 %v1198_v34 }
 0x111   :  { %983 = vmatprep.subr.bf16.mxu1 %v1054_v0 }
 0x1b3   :  { %v274_v36 = vpop.f32.mrf.mxu1 }
 0x1b4   :  { %v275_v37 = vadd.f32 %v1265_v53, %v274_v36 }
 0x1b5   :  { %v921_v39 = vpop.f32.mrf.mxu1 }
 0x1b6   :  { %v285_v41 = vmul.f32 %v1270_v56, %v275_v37  ;;  %v447_v37 = vmul.f32 %v1128_v7, %v376_v60  ;;  %v449_v39 = vmul.f32 %v787_v14, %v1143_v10 }
 0x1b7   :  { %v277_v42 = vpop.f32.mrf.mxu1 }
 0x1b8   :  { %v286_v43 = vadd.f32 %v285_v41, %v284_v40  ;;  %v451_v41 = vmul.f32 %v1123_v6, %v381_v12  ;;  %v791_v42 = vld [vmem:[%s1513_s0 + $0x8] sm:$0x3] }
 0x1b9   :  { %v922_v46 = vpop.f32.mrf.mxu1 }
 0x1ba   :  { %v288_v47 = vsub.f32 %v286_v43, %v287_v44  ;;  %v452_v44 = vmul.f32 %v791_v42, %v1133_v8 }
 0x1bc   :  { %v289_v50 = vsub.f32 %v288_v47, %v283_v38  ;;  %v358_v23 = vmul.f32 %v1260_v52, %v288_v47  ;;  %v448_v38 = vadd.f32 %v1138_v9, %v447_v37  ;;  %v453_v46 = vadd.f32 %v452_v44, %v451_v41 }
 0x1be   :  { %vm290_vm5 = vcmp.gt.f32.partialorder %v289_v50, 0.0  ;;  %v450_v40 = vadd.f32 %v449_v39, %v448_v38 }
 0x1bf   :  { %v778_v51 = vsel %vm290_vm5, 1.0, %v1054_v0 }
 0x1c0   :  { %780 = vst [vmem:[%s1515_s4 + $0x2] sm:$0x3] %v778_v51  ;;  %v312_v54 = vadd.f32 %v782_v31, %v778_v51  ;;  %v356_v16 = vmul.f32 %v778_v51, %v1247_v48  ;;  %v454_v43 = vmul.f32 %v787_v14, %v450_v40 }
 0x1c2   :  { %v313_v55 = vpack.c.bf16 %v312_v54, %v312_v54  ;;  %v357_v21 = vadd.f32 %v356_v16, %v355_v17  ;;  %v455_v47 = vsub.f32 %v453_v46, %v454_v43 }
 0x1c4   :  { %940 = vmatmul.mubr.bf16.vlgmr.msra.gmra.mxu0 %v313_v55  ;;  %v361_v29 = vmul.f32 %v778_v51, %v357_v21  ;;  %v456_v50 = vsub.f32 %v455_v47, %v450_v40  ;;  %v428_v54 = vmul.f32 %v1241_v45, %v357_v21 }
 0x1c5   :  { %964 = vmatpush3.bf16.msra.mxu0 %v1090_v1  ;;  %979 = vmatprep.mubr.msk.bf16.mxu0 %vm1055_vm0, %v1054_v0 }
 0x1c6   :  { %965 = vmatprep.subr.bf16.mxu0 %v1054_v0  ;;  %vm457_vm8 = vcmp.gt.f32.partialorder %v456_v50, 0.0  ;;  %v429_v57 = vadd.f32 %v1252_v49, %v428_v54 }
 0x1c7   :  { %v792_v51 = vsel %vm457_vm8, 1.0, %v1054_v0 }
 0x1c8   :  { %794 = vst [vmem:[%s1514_s3 + $0x8] sm:$0x3] %v792_v51 }
 0x1c9   :  { %966 = vmatpush3.bf16.msra.mxu0 %v1101_v3 }
 0x1ca   :  { %967 = vmatprep.subr.bf16.mxu0 %v1054_v0 }
 0x1cd   :  { %968 = vmatpush3.bf16.msra.mxu0 %v1110_v4 }
 0x1ce   :  { %969 = vmatprep.subr.bf16.mxu0 %v1054_v0 }
 0x1d1   :  { %970 = vmatpush3.bf16.msra.mxu0 %v1118_v5 }
 0x1d2   :  { %971 = vmatprep.subr.bf16.mxu0 %v1054_v0 }
 0x1d5   :  { %972 = vmatpush3.bf16.msra.mxu0 %v1161_v20 }
 0x1d6   :  { %973 = vmatprep.subr.bf16.mxu0 %v1054_v0 }
 0x1d9   :  { %974 = vmatpush3.bf16.msra.mxu0 %v1170_v24 }
 0x1da   :  { %975 = vmatprep.subr.bf16.mxu0 %v1054_v0 }
 0x1dd   :  { %976 = vmatpush3.bf16.msra.mxu0 %v1180_v28 }
 0x1de   :  { %977 = vmatprep.subr.bf16.mxu0 %v1054_v0 }
 0x1e1   :  { %978 = vmatpush3.bf16.msra.mxu0 %v1198_v34 }
 0x1e2   :  { %1003 = vmatprep.subr.bf16.mxu0 %v1054_v0 }
 0x284   :  { %v348_v18 = vpop.f32.mrf.mxu0 }
 0x285   :  { %v349_v19 = vadd.f32 %v1265_v53, %v348_v18 }
 0x286   :  { %v941_v22 = vpop.f32.mrf.mxu0 }
 0x287   :  { %v359_v25 = vmul.f32 %v1270_v56, %v349_v19  ;;  %v521_v19 = vmul.f32 %v1128_v7, %v450_v40  ;;  %v523_v22 = vmul.f32 %v792_v51, %v1143_v10 }
 0x288   :  { %v351_v26 = vpop.f32.mrf.mxu0 }
 0x289   :  { %v360_v27 = vadd.f32 %v359_v25, %v358_v23  ;;  %v525_v25 = vmul.f32 %v1123_v6, %v455_v47  ;;  %v796_v26 = vld [vmem:[%s1513_s0 + $0xa] sm:$0x3] }
 0x28a   :  { %v942_v30 = vpop.f32.mrf.mxu0 }
 0x28b   :  { %v362_v31 = vsub.f32 %v360_v27, %v361_v29  ;;  %v526_v29 = vmul.f32 %v796_v26, %v1133_v8 }
 0x28d   :  { %v363_v32 = vsub.f32 %v362_v31, %v357_v21  ;;  %v432_v62 = vmul.f32 %v1260_v52, %v362_v31  ;;  %v522_v21 = vadd.f32 %v1138_v9, %v521_v19  ;;  %v527_v30 = vadd.f32 %v526_v29, %v525_v25 }
 0x28f   :  { %vm364_vm7 = vcmp.gt.f32.partialorder %v363_v32, 0.0  ;;  %v524_v23 = vadd.f32 %v523_v22, %v522_v21 }
 0x290   :  { %v783_v33 = vsel %vm364_vm7, 1.0, %v1054_v0 }
 0x291   :  { %785 = vst [vmem:[%s1515_s4 + $0x4] sm:$0x3] %v783_v33  ;;  %v386_v35 = vadd.f32 %v787_v14, %v783_v33  ;;  %v430_v55 = vmul.f32 %v783_v33, %v1247_v48  ;;  %v528_v27 = vmul.f32 %v792_v51, %v524_v23 }
 0x293   :  { %v387_v36 = vpack.c.bf16 %v386_v35, %v386_v35  ;;  %v431_v60 = vadd.f32 %v430_v55, %v429_v57  ;;  %v529_v31 = vsub.f32 %v527_v30, %v528_v27 }
 0x295   :  { %960 = vmatmul.mubr.bf16.vlgmr.msra.gmra.mxu1 %v387_v36  ;;  %v435_v12 = vmul.f32 %v783_v33, %v431_v60  ;;  %v530_v32 = vsub.f32 %v529_v31, %v524_v23  ;;  %v502_v35 = vmul.f32 %v1241_v45, %v431_v60 }
 0x296   :  { %984 = vmatpush3.bf16.msra.mxu1 %v1090_v1  ;;  %999 = vmatprep.mubr.msk.bf16.mxu1 %vm1055_vm0, %v1054_v0 }
 0x297   :  { %985 = vmatprep.subr.bf16.mxu1 %v1054_v0  ;;  %vm531_vm10 = vcmp.gt.f32.partialorder %v530_v32, 0.0  ;;  %v503_v37 = vadd.f32 %v1252_v49, %v502_v35  ;;  %v806_v35 = vld [vmem:[%s1513_s0 + $0xe] sm:$0x3] }
 0x298   :  { %v797_v33 = vsel %vm531_vm10, 1.0, %v1054_v0 }
 0x299   :  { %799 = vst [vmem:[%s1514_s3 + $0xa] sm:$0x3] %v797_v33 }
 0x29a   :  { %986 = vmatpush3.bf16.msra.mxu1 %v1101_v3 }
 0x29b   :  { %987 = vmatprep.subr.bf16.mxu1 %v1054_v0 }
 0x29e   :  { %988 = vmatpush3.bf16.msra.mxu1 %v1110_v4 }
 0x29f   :  { %989 = vmatprep.subr.bf16.mxu1 %v1054_v0 }
 0x2a2   :  { %990 = vmatpush3.bf16.msra.mxu1 %v1118_v5 }
 0x2a3   :  { %991 = vmatprep.subr.bf16.mxu1 %v1054_v0 }
 0x2a6   :  { %992 = vmatpush3.bf16.msra.mxu1 %v1161_v20 }
 0x2a7   :  { %993 = vmatprep.subr.bf16.mxu1 %v1054_v0 }
 0x2aa   :  { %994 = vmatpush3.bf16.msra.mxu1 %v1170_v24 }
 0x2ab   :  { %995 = vmatprep.subr.bf16.mxu1 %v1054_v0 }
 0x2ae   :  { %996 = vmatpush3.bf16.msra.mxu1 %v1180_v28 }
 0x2af   :  { %997 = vmatprep.subr.bf16.mxu1 %v1054_v0 }
 0x2b2   :  { %998 = vmatpush3.bf16.msra.mxu1 %v1198_v34 }
 0x2b3   :  { %1023 = vmatprep.subr.bf16.mxu1 %v1054_v0 }
 0x355   :  { %v422_v58 = vpop.f32.mrf.mxu1 }
 0x356   :  { %v423_v59 = vadd.f32 %v1265_v53, %v422_v58 }
 0x357   :  { %v961_v61 = vpop.f32.mrf.mxu1 }
 0x358   :  { %v433_v63 = vmul.f32 %v1270_v56, %v423_v59 }
 0x359   :  { %v425_v2 = vpop.f32.mrf.mxu1 }
 0x35a   :  { %v434_v11 = vadd.f32 %v433_v63, %v432_v62 }
 0x35b   :  { %v962_v13 = vpop.f32.mrf.mxu1 }
 0x35c   :  { %v436_v14 = vsub.f32 %v434_v11, %v435_v12 }
 0x35e   :  { %v437_v15 = vsub.f32 %v436_v14, %v431_v60  ;;  %v506_v42 = vmul.f32 %v1260_v52, %v436_v14 }
 0x360   :  { %vm438_vm9 = vcmp.gt.f32.partialorder %v437_v15, 0.0 }
 0x361   :  { %v788_v16 = vsel %vm438_vm9, 1.0, %v1054_v0 }
 0x362   :  { %790 = vst [vmem:[%s1515_s4 + $0x6] sm:$0x3] %v788_v16  ;;  %v460_v17 = vadd.f32 %v792_v51, %v788_v16  ;;  %v504_v36 = vmul.f32 %v788_v16, %v1247_v48 }
 0x364   :  { %v461_v18 = vpack.c.bf16 %v460_v17, %v460_v17  ;;  %v505_v40 = vadd.f32 %v504_v36, %v503_v37  ;;  %v674_v37 = vmul.f32 %v806_v35, %v1133_v8 }
 0x366   :  { %980 = vmatmul.mubr.bf16.vlgmr.msra.gmra.mxu0 %v461_v18  ;;  %v509_v47 = vmul.f32 %v788_v16, %v505_v40  ;;  %v576_v63 = vmul.f32 %v1241_v45, %v505_v40 }
 0x367   :  { %1004 = vmatpush3.bf16.msra.mxu0 %v1090_v1  ;;  %1019 = vmatprep.mubr.msk.bf16.mxu0 %vm1055_vm0, %v1054_v0 }
 0x368   :  { %1005 = vmatprep.subr.bf16.mxu0 %v1054_v0  ;;  %v577_v11 = vadd.f32 %v1252_v49, %v576_v63 }
 0x36b   :  { %1006 = vmatpush3.bf16.msra.mxu0 %v1101_v3 }
 0x36c   :  { %1007 = vmatprep.subr.bf16.mxu0 %v1054_v0 }
 0x36f   :  { %1008 = vmatpush3.bf16.msra.mxu0 %v1110_v4 }
 0x370   :  { %1009 = vmatprep.subr.bf16.mxu0 %v1054_v0 }
 0x373   :  { %1010 = vmatpush3.bf16.msra.mxu0 %v1118_v5 }
 0x374   :  { %1011 = vmatprep.subr.bf16.mxu0 %v1054_v0 }
 0x377   :  { %1012 = vmatpush3.bf16.msra.mxu0 %v1161_v20 }
 0x378   :  { %1013 = vmatprep.subr.bf16.mxu0 %v1054_v0 }
 0x37b   :  { %1014 = vmatpush3.bf16.msra.mxu0 %v1170_v24 }
 0x37c   :  { %1015 = vmatprep.subr.bf16.mxu0 %v1054_v0 }
 0x37f   :  { %1016 = vmatpush3.bf16.msra.mxu0 %v1180_v28 }
 0x380   :  { %1017 = vmatprep.subr.bf16.mxu0 %v1054_v0 }
 0x383   :  { %1018 = vmatpush3.bf16.msra.mxu0 %v1198_v34 }
 0x426   :  { %v496_v38 = vpop.f32.mrf.mxu0 }
 0x427   :  { %v497_v39 = vadd.f32 %v1265_v53, %v496_v38 }
 0x428   :  { %v981_v41 = vpop.f32.mrf.mxu0 }
 0x429   :  { %v507_v43 = vmul.f32 %v1270_v56, %v497_v39 }
 0x42a   :  { %v499_v44 = vpop.f32.mrf.mxu0 }
 0x42b   :  { %v508_v46 = vadd.f32 %v507_v43, %v506_v42 }
 0x42c   :  { %v982_v50 = vpop.f32.mrf.mxu0 }
 0x42d   :  { %v510_v51 = vsub.f32 %v508_v46, %v509_v47 }
 0x42f   :  { %v511_v54 = vsub.f32 %v510_v51, %v505_v40  ;;  %v580_v16 = vmul.f32 %v1260_v52, %v510_v51 }
 0x431   :  { %vm512_vm11 = vcmp.gt.f32.partialorder %v511_v54, 0.0 }
 0x432   :  { %v793_v55 = vsel %vm512_vm11, 1.0, %v1054_v0 }
 0x433   :  { %795 = vst [vmem:[%s1515_s4 + $0x8] sm:$0x3] %v793_v55  ;;  %v534_v57 = vadd.f32 %v797_v33, %v793_v55  ;;  %v578_v2 = vmul.f32 %v793_v55, %v1247_v48 }
 0x435   :  { %v535_v58 = vpack.c.bf16 %v534_v57, %v534_v57  ;;  %v579_v14 = vadd.f32 %v578_v2, %v577_v11 }
 0x437   :  { %1000 = vmatmul.mubr.bf16.vlgmr.msra.gmra.mxu1 %v535_v58  ;;  %v583_v21 = vmul.f32 %v793_v55, %v579_v14 }
 0x438   :  { %1024 = vmatpush3.bf16.msra.mxu1 %v1090_v1  ;;  %1039 = vmatprep.mubr.msk.bf16.mxu1 %vm1055_vm0, %v1054_v0  ;;  %v595_v1 = vmul.f32 %v1128_v7, %v524_v23 }
 0x439   :  { %1025 = vmatprep.subr.bf16.mxu1 %v1054_v0 }
 0x43c   :  { %1026 = vmatpush3.bf16.msra.mxu1 %v1101_v3  ;;  %v596_v3 = vadd.f32 %v1138_v9, %v595_v1 }
 0x43d   :  { %1027 = vmatprep.subr.bf16.mxu1 %v1054_v0 }
 0x440   :  { %1028 = vmatpush3.bf16.msra.mxu1 %v1110_v4  ;;  %v597_v4 = vmul.f32 %v797_v33, %v1143_v10 }
 0x441   :  { %1029 = vmatprep.subr.bf16.mxu1 %v1054_v0 }
 0x444   :  { %1030 = vmatpush3.bf16.msra.mxu1 %v1118_v5  ;;  %v598_v5 = vadd.f32 %v597_v4, %v596_v3 }
 0x445   :  { %1031 = vmatprep.subr.bf16.mxu1 %v1054_v0 }
 0x446   :  { %v602_v59 = vmul.f32 %v797_v33, %v598_v5 }
 0x448   :  { %1032 = vmatpush3.bf16.msra.mxu1 %v1161_v20  ;;  %v599_v20 = vmul.f32 %v1123_v6, %v529_v31  ;;  %v669_v31 = vmul.f32 %v1128_v7, %v598_v5 }
 0x449   :  { %1033 = vmatprep.subr.bf16.mxu1 %v1054_v0 }
 0x44a   :  { %v670_v33 = vadd.f32 %v1138_v9, %v669_v31 }
 0x44c   :  { %1034 = vmatpush3.bf16.msra.mxu1 %v1170_v24  ;;  %v801_v24 = vld [vmem:[%s1513_s0 + $0xc] sm:$0x3] }
 0x44d   :  { %1035 = vmatprep.subr.bf16.mxu1 %v1054_v0 }
 0x450   :  { %1036 = vmatpush3.bf16.msra.mxu1 %v1180_v28  ;;  %v600_v28 = vmul.f32 %v801_v24, %v1133_v8 }
 0x451   :  { %1037 = vmatprep.subr.bf16.mxu1 %v1054_v0 }
 0x452   :  { %v601_v60 = vadd.f32 %v600_v28, %v599_v20 }
 0x454   :  { %1038 = vmatpush3.bf16.msra.mxu1 %v1198_v34  ;;  %v603_v61 = vsub.f32 %v601_v60, %v602_v59 }
 0x456   :  { %v604_v62 = vsub.f32 %v603_v61, %v598_v5  ;;  %v673_v32 = vmul.f32 %v1123_v6, %v603_v61  ;;  %v650_v6 = vmul.f32 %v1241_v45, %v579_v14 }
 0x458   :  { %vm605_vm12 = vcmp.gt.f32.partialorder %v604_v62, 0.0  ;;  %v675_v38 = vadd.f32 %v674_v37, %v673_v32  ;;  %v651_v8 = vadd.f32 %v1252_v49, %v650_v6 }
 0x459   :  { %v802_v34 = vsel %vm605_vm12, 1.0, %v1054_v0 }
 0x45a   :  { %804 = vst [vmem:[%s1514_s3 + $0xc] sm:$0x3] %v802_v34  ;;  %v671_v30 = vmul.f32 %v802_v34, %v1143_v10 }
 0x45c   :  { %v672_v36 = vadd.f32 %v671_v30, %v670_v33 }
 0x45e   :  { %v676_v39 = vmul.f32 %v802_v34, %v672_v36  ;;  %742 = vst [vmem:[#allocation3] sm:$0x3] %v672_v36 }
 0x460   :  { %v677_v40 = vsub.f32 %v675_v38, %v676_v39 }
 0x462   :  { %v678_v41 = vsub.f32 %v677_v40, %v672_v36  ;;  %741 = vst [vmem:[#allocation2] sm:$0x3] %v677_v40 }
 0x464   :  { %vm679_vm14 = vcmp.gt.f32.partialorder %v678_v41, 0.0 }
 0x465   :  { %v807_v7 = vsel %vm679_vm14, 1.0, %v1054_v0 }
 0x466   :  { %809 = vst [vmem:[%s1514_s3 + $0xe] sm:$0x3] %v807_v7  ;;  %743 = vst [vmem:[#allocation4] sm:$0x3] %v807_v7 }
 0x4f7   :  { %v570_v12 = vpop.f32.mrf.mxu1 }
 0x4f8   :  { %v571_v13 = vadd.f32 %v1265_v53, %v570_v12 }
 0x4f9   :  { %v1001_v15 = vpop.f32.mrf.mxu1 }
 0x4fa   :  { %v581_v17 = vmul.f32 %v1270_v56, %v571_v13 }
 0x4fb   :  { %v573_v18 = vpop.f32.mrf.mxu1 }
 0x4fc   :  { %v582_v19 = vadd.f32 %v581_v17, %v580_v16 }
 0x4fd   :  { %v1002_v22 = vpop.f32.mrf.mxu1 }
 0x4fe   :  { %v584_v23 = vsub.f32 %v582_v19, %v583_v21 }
 0x500   :  { %v585_v25 = vsub.f32 %v584_v23, %v579_v14  ;;  %v654_v46 = vmul.f32 %v1260_v52, %v584_v23 }
 0x502   :  { %vm586_vm13 = vcmp.gt.f32.partialorder %v585_v25, 0.0 }
 0x503   :  { %v798_v26 = vsel %vm586_vm13, 1.0, %v1054_v0 }
 0x504   :  { %800 = vst [vmem:[%s1515_s4 + $0xa] sm:$0x3] %v798_v26  ;;  %v608_v27 = vadd.f32 %v802_v34, %v798_v26  ;;  %v652_v9 = vmul.f32 %v798_v26, %v1247_v48 }
 0x506   :  { %v609_v29 = vpack.c.bf16 %v608_v27, %v608_v27  ;;  %v653_v43 = vadd.f32 %v652_v9, %v651_v8 }
 0x508   :  { %1020 = vmatmul.mubr.bf16.vlgmr.msra.gmra.mxu0 %v609_v29  ;;  %v657_v54 = vmul.f32 %v798_v26, %v653_v43  ;;  %v724_v1 = vmul.f32 %v1241_v45, %v653_v43 }
 0x50a   :  { %v725_v20 = vadd.f32 %v1252_v49, %v724_v1 }
 0x5c8   :  { %v644_v10 = vpop.f32.mrf.mxu0 }
 0x5c9   :  { %v645_v42 = vadd.f32 %v1265_v53, %v644_v10 }
 0x5ca   :  { %v1021_v44 = vpop.f32.mrf.mxu0 }
 0x5cb   :  { %v655_v47 = vmul.f32 %v1270_v56, %v645_v42 }
 0x5cc   :  { %v647_v50 = vpop.f32.mrf.mxu0 }
 0x5cd   :  { %v656_v51 = vadd.f32 %v655_v47, %v654_v46 }
 0x5ce   :  { %v1022_v55 = vpop.f32.mrf.mxu0 }
 0x5cf   :  { %v658_v57 = vsub.f32 %v656_v51, %v657_v54 }
 0x5d1   :  { %v659_v58 = vsub.f32 %v658_v57, %v653_v43  ;;  %v728_v61 = vmul.f32 %v1260_v52, %v658_v57 }
 0x5d3   :  { %vm660_vm15 = vcmp.gt.f32.partialorder %v659_v58, 0.0 }
 0x5d4   :  { %v803_v3 = vsel %vm660_vm15, 1.0, %v1054_v0 }
 0x5d5   :  { %805 = vst [vmem:[%s1515_s4 + $0xc] sm:$0x3] %v803_v3  ;;  %v726_v4 = vmul.f32 %v803_v3, %v1247_v48  ;;  %v682_v5 = vadd.f32 %v807_v7, %v803_v3 }
 0x5d7   :  { %v683_v24 = vpack.c.bf16 %v682_v5, %v682_v5  ;;  %v727_v59 = vadd.f32 %v726_v4, %v725_v20 }
 0x5d9   :  { %1040 = vmatmul.mubr.bf16.vlgmr.msra.gmra.mxu1 %v683_v24  ;;  %745 = vst [vmem:[#allocation6] sm:$0x3] %v727_v59  ;;  %v731_v2 = vmul.f32 %v803_v3, %v727_v59 }
 0x699   :  { %v718_v28 = vpop.f32.mrf.mxu1 }
 0x69a   :  { %v719_v60 = vadd.f32 %v1265_v53, %v718_v28 }
 0x69b   :  { %v1041_v45 = vpop.f32.mrf.mxu1 }
 0x69c   :  { %v729_v62 = vmul.f32 %v1270_v56, %v719_v60 }
 0x69d   :  { %v721_v34 = vpop.f32.mrf.mxu1 }
 0x69e   :  { %v730_v63 = vadd.f32 %v729_v62, %v728_v61 }
 0x69f   :  { %v1042_v11 = vpop.f32.mrf.mxu1 }
 0x6a0   :  { %v732_v48 = vsub.f32 %v730_v63, %v731_v2 }
 0x6a2   :  { %v733_v12 = vsub.f32 %v732_v48, %v727_v59  ;;  %744 = vst [vmem:[#allocation5] sm:$0x3] %v732_v48 }
 0x6a4   :  { %vm734_vm0 = vcmp.gt.f32.partialorder %v733_v12, 0.0 }
 0x6a5   :  { %v808_v49 = vsel %vm734_vm0, 1.0, %v1054_v0 }
 0x6a6   :  { %810 = vst [vmem:[%s1515_s4 + $0xe] sm:$0x3] %v808_v49  ;;  %746 = vst [vmem:[#allocation7] sm:$0x3] %v808_v49 }

</bundles_post_ra>
